<compile_context>
chip_gen: v5e
topology: v5e:2x2
jax: 0.10.0
libtpu: 0.0.40
codegen_flags: <defaults>
</compile_context>

<pallas_src>
import math

import jax
import jax.numpy as jnp
from jax import lax
from jax.experimental import pallas as pl
from jax.experimental.pallas import tpu as pltpu

INPUT_FEATURES = 12
HIDDEN_DIM = 64
MAX_TS = 2048     # sites per grid step (lane axis); sweep 1024-4096 on big shapes
LANE = 128


def _round_up(x, m):
    return (x + m - 1) // m * m


def _gelu_exact(x):
    # Matches torch.nn.GELU() default (erf-based, exact).
    return 0.5 * x * (1.0 + lax.erf(x * (1.0 / math.sqrt(2.0))))


def _stable_mlp_kernel(x_ref, w1_ref, b1_ref, w2_ref, b2_ref, w3_ref, b3_ref, o_ref):
    # x_ref block: (1, 12, TS). Weights are feature-major (out, in); w1/w2 are bf16.
    x = x_ref[0].astype(jnp.bfloat16)                                    # (12, TS)

    h1 = jnp.dot(w1_ref[...], x, preferred_element_type=jnp.float32)    # (64, TS) f32
    h1 = _gelu_exact(h1 + b1_ref[...])                                   # bias (64,1) bcast

    h2 = jnp.dot(w2_ref[...], h1.astype(jnp.bfloat16),
                 preferred_element_type=jnp.float32)                     # (64, TS) f32
    h2 = _gelu_exact(h2 + b2_ref[...])

    # 64 -> 1 projection off the MXU: VPU multiply + cross-sublane reduce (XLU).
    h3 = jnp.sum(h2 * w3_ref[...], axis=0, keepdims=True) + b3_ref[...]  # (1, TS)

    o_ref[0] = jnp.pi * jnp.tanh(h3)                                     # lane-dense store


@jax.jit
def stable_mlp_forward(x, params):
    """x: (B, 12, 2, L, L) float32 -> (B, 2, L, L) float32."""
    w1, b1, w2, b2, w3, b3 = params   # stored as (in, out) / (1, out)
    B = x.shape[0]
    L = x.shape[3]
    S = 2 * L * L

    # Feature-major view: pure reshape of the native layout (no transpose, no HBM copy).
    x_r = x.reshape(B, INPUT_FEATURES, S)

    # Keep the lane axis a multiple of 128 (only copies when S is unaligned).
    S_pad = _round_up(S, LANE)
    if S_pad != S:
        x_r = jnp.pad(x_r, ((0, 0), (0, 0), (0, S_pad - S)))
    TS = min(MAX_TS, S_pad)
    n_s = pl.cdiv(S_pad, TS)

    # Weight prep (tiny, done once per trace): feature-major + bf16 for the MXU layers.
    w1t = w1.T.astype(jnp.bfloat16)           # (64, 12)
    w2t = w2.T.astype(jnp.bfloat16)           # (64, 64)
    b1c = b1.reshape(HIDDEN_DIM, 1)           # (64, 1) f32
    b2c = b2.reshape(HIDDEN_DIM, 1)           # (64, 1) f32
    w3c = w3.reshape(HIDDEN_DIM, 1)           # (64, 1) f32 (VPU path, keep full precision)
    b3c = b3.reshape(1, 1)                    # (1, 1)  f32

    n_sites = B * S_pad
    cost = pl.CostEstimate(
        flops=2 * n_sites * (INPUT_FEATURES * HIDDEN_DIM
                             + HIDDEN_DIM * HIDDEN_DIM
                             + HIDDEN_DIM),
        transcendentals=n_sites * (2 * HIDDEN_DIM + 1),
        bytes_accessed=n_sites * (INPUT_FEATURES * 4 + 4),
    )

    out = pl.pallas_call(
        _stable_mlp_kernel,
        out_shape=jax.ShapeDtypeStruct((B, 1, S_pad), jnp.float32),
        grid_spec=pltpu.PrefetchScalarGridSpec(
            num_scalar_prefetch=0,
            grid=(B, n_s),
            in_specs=[
                pl.BlockSpec((1, INPUT_FEATURES, TS), lambda b, s: (b, 0, s)),
                pl.BlockSpec((HIDDEN_DIM, INPUT_FEATURES), lambda b, s: (0, 0)),
                pl.BlockSpec((HIDDEN_DIM, 1), lambda b, s: (0, 0)),
                pl.BlockSpec((HIDDEN_DIM, HIDDEN_DIM), lambda b, s: (0, 0)),
                pl.BlockSpec((HIDDEN_DIM, 1), lambda b, s: (0, 0)),
                pl.BlockSpec((HIDDEN_DIM, 1), lambda b, s: (0, 0)),
                pl.BlockSpec((1, 1), lambda b, s: (0, 0)),
            ],
            out_specs=pl.BlockSpec((1, 1, TS), lambda b, s: (b, 0, s)),
        ),
        compiler_params=pltpu.CompilerParams(
            dimension_semantics=("parallel", "parallel"),
        ),
        cost_estimate=cost,
    )(x_r, w1t, b1c, w2t, b2c, w3c, b3c)

    out = out[:, 0, :S]
    return out.reshape(B, 2, L, L)


def init_params(key):
    """Deterministic init mirroring torch.nn.Linear shapes (stored transposed: (in, out))."""
    ks = jax.random.split(key, 6)

    def linear(kw, kb, fan_in, fan_out):
        bound = 1.0 / math.sqrt(fan_in)
        w = jax.random.uniform(kw, (fan_in, fan_out), jnp.float32, -bound, bound)
        b = jax.random.uniform(kb, (1, fan_out), jnp.float32, -bound, bound)
        return w, b

    w1, b1 = linear(ks[0], ks[1], INPUT_FEATURES, HIDDEN_DIM)
    w2, b2 = linear(ks[2], ks[3], HIDDEN_DIM, HIDDEN_DIM)
    w3, b3 = linear(ks[4], ks[5], HIDDEN_DIM, 1)
    return (w1, b1, w2, b2, w3, b3)


def _reference_forward_f32(x, params):
    """Pure-JAX f32 reference mirroring the PyTorch module exactly."""
    w1, b1, w2, b2, w3, b3 = params
    B = x.shape[0]
    L = x.shape[3]
    xf = jnp.transpose(x, (0, 2, 3, 4, 1)).reshape(-1, INPUT_FEATURES)
    h = _gelu_exact(xf @ w1 + b1)
    h = _gelu_exact(h @ w2 + b2)
    o = jnp.pi * jnp.tanh(h @ w3 + b3)
    return o.reshape(B, 2, L, L)


def _reference_forward_matched(x, params):
    """Reference using the kernel's precision choices (bf16 MXU operands, f32 accumulate)."""
    w1, b1, w2, b2, w3, b3 = params
    B = x.shape[0]
    L = x.shape[3]
    xf = jnp.transpose(x, (0, 2, 3, 4, 1)).reshape(-1, INPUT_FEATURES)
    h = jnp.dot(xf.astype(jnp.bfloat16), w1.astype(jnp.bfloat16),
                preferred_element_type=jnp.float32) + b1
    h = _gelu_exact(h)
    h = jnp.dot(h.astype(jnp.bfloat16), w2.astype(jnp.bfloat16),
                preferred_element_type=jnp.float32) + b2
    h = _gelu_exact(h)
    o = jnp.pi * jnp.tanh(jnp.dot(h, w3, preferred_element_type=jnp.float32) + b3)
    return o.reshape(B, 2, L, L)


if __name__ == "__main__":
    key = jax.random.PRNGKey(0)
    k_x, k_p = jax.random.split(key)

    B, L = 2, 8
    # Input matches PyTorch module expectation: (B, 12, 2, L, L)
    x = jax.random.normal(k_x, (B, INPUT_FEATURES, 2, L, L), dtype=jnp.float32)
    params = init_params(k_p)

    out = stable_mlp_forward(x, params)
    out = jax.block_until_ready(out)
    assert out.shape == (B, 2, L, L)

    # Tight check vs a matched-precision (bf16-matmul) reference.
    ref_matched = _reference_forward_matched(x, params)
    assert jnp.allclose(out, ref_matched, atol=2e-4, rtol=2e-4), \
        "mismatch vs matched-precision reference"

    # Loose semantic check vs the full-f32 reference (bf16 MXU inputs per perf review).
    ref_f32 = _reference_forward_f32(x, params)
    assert jnp.allclose(out, ref_f32, atol=5e-2, rtol=5e-2), "mismatch vs f32 reference"

    print("KERNEL_OK")
</pallas_src>

<mosaic_0001>
module attributes {stable_mosaic.version = 11 : i64} {
  func.func @_stable_mlp_kernel(%arg0: i32, %arg1: i32, %arg2: memref<1x12x128xf32, #tpu.memory_space<vmem>>, %arg3: memref<64x12xbf16, #tpu.memory_space<vmem>>, %arg4: memref<64x1xf32, #tpu.memory_space<vmem>>, %arg5: memref<64x64xbf16, #tpu.memory_space<vmem>>, %arg6: memref<64x1xf32, #tpu.memory_space<vmem>>, %arg7: memref<64x1xf32, #tpu.memory_space<vmem>>, %arg8: memref<1x1xf32, #tpu.memory_space<vmem>>, %arg9: memref<1x1x128xf32, #tpu.memory_space<vmem>>) attributes {dimension_semantics = [#tpu.dimension_semantics<parallel>, #tpu.dimension_semantics<parallel>], iteration_bounds = array<i64: 2, 1>, scalar_prefetch = 0 : i64, scratch_operands = 0 : i64, tpu.core_type = #tpu.core_type<tc>, window_params = [{transform_indices = @transform_0, window_bounds = array<i64: 1, 12, 128>}, {pipeline_mode = #tpu.pipeline_mode<synchronous>, transform_indices = @transform_1, window_bounds = array<i64: 64, 12>}, {pipeline_mode = #tpu.pipeline_mode<synchronous>, transform_indices = @transform_2, window_bounds = array<i64: 64, 1>}, {pipeline_mode = #tpu.pipeline_mode<synchronous>, transform_indices = @transform_3, window_bounds = array<i64: 64, 64>}, {pipeline_mode = #tpu.pipeline_mode<synchronous>, transform_indices = @transform_4, window_bounds = array<i64: 64, 1>}, {pipeline_mode = #tpu.pipeline_mode<synchronous>, transform_indices = @transform_5, window_bounds = array<i64: 64, 1>}, {pipeline_mode = #tpu.pipeline_mode<synchronous>, transform_indices = @transform_6, window_bounds = array<i64: 1, 1>}, {transform_indices = @transform_7, window_bounds = array<i64: 1, 1, 128>}]} {
    %c0 = arith.constant 0 : index
    %c0_0 = arith.constant 0 : index
    %c0_1 = arith.constant 0 : index
    %0 = vector.load %arg2[%c0, %c0_0, %c0_1] : memref<1x12x128xf32, #tpu.memory_space<vmem>>, vector<1x12x128xf32>
    %1 = vector.shape_cast %0 : vector<1x12x128xf32> to vector<12x128xf32>
    %2 = arith.truncf %1 : vector<12x128xf32> to vector<12x128xbf16>
    %c0_2 = arith.constant 0 : index
    %c0_3 = arith.constant 0 : index
    %3 = vector.load %arg3[%c0_2, %c0_3] : memref<64x12xbf16, #tpu.memory_space<vmem>>, vector<64x12xbf16>
    %cst = arith.constant dense<0.000000e+00> : vector<64x128xf32>
    %4 = tpu.matmul %3, %2, %cst {dimension_numbers = #tpu.dot_dimension_numbers<[1], [0], [0], [1], [0, 0, 1, 1], [], []>} : vector<64x12xbf16>, vector<12x128xbf16>, vector<64x128xf32> -> vector<64x128xf32>
    %c0_4 = arith.constant 0 : index
    %c0_5 = arith.constant 0 : index
    %5 = vector.load %arg4[%c0_4, %c0_5] : memref<64x1xf32, #tpu.memory_space<vmem>>, vector<64x1xf32>
    %6 = vector.broadcast %5 : vector<64x1xf32> to vector<64x128xf32>
    %7 = arith.addf %4, %6 : vector<64x128xf32>
    %cst_6 = arith.constant 5.000000e-01 : f32
    %8 = vector.broadcast %cst_6 : f32 to vector<64x128xf32>
    %9 = arith.mulf %8, %7 : vector<64x128xf32>
    %cst_7 = arith.constant 0.707106769 : f32
    %10 = vector.broadcast %cst_7 : f32 to vector<64x128xf32>
    %11 = arith.mulf %7, %10 : vector<64x128xf32>
    %12 = math.erf %11 : vector<64x128xf32>
    %cst_8 = arith.constant 1.000000e+00 : f32
    %13 = vector.broadcast %cst_8 : f32 to vector<64x128xf32>
    %14 = arith.addf %13, %12 : vector<64x128xf32>
    %15 = arith.mulf %9, %14 : vector<64x128xf32>
    %c0_9 = arith.constant 0 : index
    %c0_10 = arith.constant 0 : index
    %16 = vector.load %arg5[%c0_9, %c0_10] : memref<64x64xbf16, #tpu.memory_space<vmem>>, vector<64x64xbf16>
    %17 = arith.truncf %15 : vector<64x128xf32> to vector<64x128xbf16>
    %cst_11 = arith.constant dense<0.000000e+00> : vector<64x128xf32>
    %18 = tpu.matmul %16, %17, %cst_11 {dimension_numbers = #tpu.dot_dimension_numbers<[1], [0], [0], [1], [0, 0, 1, 1], [], []>} : vector<64x64xbf16>, vector<64x128xbf16>, vector<64x128xf32> -> vector<64x128xf32>
    %c0_12 = arith.constant 0 : index
    %c0_13 = arith.constant 0 : index
    %19 = vector.load %arg6[%c0_12, %c0_13] : memref<64x1xf32, #tpu.memory_space<vmem>>, vector<64x1xf32>
    %20 = vector.broadcast %19 : vector<64x1xf32> to vector<64x128xf32>
    %21 = arith.addf %18, %20 : vector<64x128xf32>
    %cst_14 = arith.constant 5.000000e-01 : f32
    %22 = vector.broadcast %cst_14 : f32 to vector<64x128xf32>
    %23 = arith.mulf %22, %21 : vector<64x128xf32>
    %cst_15 = arith.constant 0.707106769 : f32
    %24 = vector.broadcast %cst_15 : f32 to vector<64x128xf32>
    %25 = arith.mulf %21, %24 : vector<64x128xf32>
    %26 = math.erf %25 : vector<64x128xf32>
    %cst_16 = arith.constant 1.000000e+00 : f32
    %27 = vector.broadcast %cst_16 : f32 to vector<64x128xf32>
    %28 = arith.addf %27, %26 : vector<64x128xf32>
    %29 = arith.mulf %23, %28 : vector<64x128xf32>
    %c0_17 = arith.constant 0 : index
    %c0_18 = arith.constant 0 : index
    %30 = vector.load %arg7[%c0_17, %c0_18] : memref<64x1xf32, #tpu.memory_space<vmem>>, vector<64x1xf32>
    %31 = vector.broadcast %30 : vector<64x1xf32> to vector<64x128xf32>
    %32 = arith.mulf %29, %31 : vector<64x128xf32>
    %cst_19 = arith.constant dense<0.000000e+00> : vector<128xf32>
    %33 = vector.multi_reduction <add>, %32, %cst_19 [0] : vector<64x128xf32> to vector<128xf32>
    %34 = vector.shape_cast %33 : vector<128xf32> to vector<1x128xf32>
    %c0_20 = arith.constant 0 : index
    %c0_21 = arith.constant 0 : index
    %35 = vector.load %arg8[%c0_20, %c0_21] : memref<1x1xf32, #tpu.memory_space<vmem>>, vector<1x1xf32>
    %36 = vector.broadcast %35 : vector<1x1xf32> to vector<1x128xf32>
    %37 = arith.addf %34, %36 : vector<1x128xf32>
    %38 = math.tanh %37 : vector<1x128xf32>
    %cst_22 = arith.constant 3.14159274 : f32
    %39 = vector.broadcast %cst_22 : f32 to vector<1x128xf32>
    %40 = arith.mulf %39, %38 : vector<1x128xf32>
    %c0_23 = arith.constant 0 : index
    %c0_24 = arith.constant 0 : index
    %c0_25 = arith.constant 0 : index
    %41 = vector.load %arg9[%c0_23, %c0_24, %c0_25] : memref<1x1x128xf32, #tpu.memory_space<vmem>>, vector<1x1x128xf32>
    %42 = vector.shape_cast %41 : vector<1x1x128xf32> to vector<1x128xf32>
    %43 = vector.shape_cast %40 : vector<1x128xf32> to vector<1x1x128xf32>
    tpu.vector_store %arg9[%c0_23, %c0_24, %c0_25], %43 {strides = array<i32>} : memref<1x1x128xf32, #tpu.memory_space<vmem>>, vector<1x1x128xf32>,
    return
  }
  func.func @transform_0(%arg0: i32, %arg1: i32) -> (i32, i32, i32) {
    %c0_i32 = arith.constant 0 : i32
    %c0_i32_0 = arith.constant 0 : i32
    return %arg0, %c0_i32, %arg1 : i32, i32, i32
  }
  func.func @transform_1(%arg0: i32, %arg1: i32) -> (i32, i32) {
    %c0_i32 = arith.constant 0 : i32
    %c0_i32_0 = arith.constant 0 : i32
    %c0_i32_1 = arith.constant 0 : i32
    return %c0_i32, %c0_i32_0 : i32, i32
  }
  func.func @transform_2(%arg0: i32, %arg1: i32) -> (i32, i32) {
    %c0_i32 = arith.constant 0 : i32
    %c0_i32_0 = arith.constant 0 : i32
    %c0_i32_1 = arith.constant 0 : i32
    return %c0_i32, %c0_i32_0 : i32, i32
  }
  func.func @transform_3(%arg0: i32, %arg1: i32) -> (i32, i32) {
    %c0_i32 = arith.constant 0 : i32
    %c0_i32_0 = arith.constant 0 : i32
    %c0_i32_1 = arith.constant 0 : i32
    return %c0_i32, %c0_i32_0 : i32, i32
  }
  func.func @transform_4(%arg0: i32, %arg1: i32) -> (i32, i32) {
    %c0_i32 = arith.constant 0 : i32
    %c0_i32_0 = arith.constant 0 : i32
    %c0_i32_1 = arith.constant 0 : i32
    return %c0_i32, %c0_i32_0 : i32, i32
  }
  func.func @transform_5(%arg0: i32, %arg1: i32) -> (i32, i32) {
    %c0_i32 = arith.constant 0 : i32
    %c0_i32_0 = arith.constant 0 : i32
    %c0_i32_1 = arith.constant 0 : i32
    return %c0_i32, %c0_i32_0 : i32, i32
  }
  func.func @transform_6(%arg0: i32, %arg1: i32) -> (i32, i32) {
    %c0_i32 = arith.constant 0 : i32
    %c0_i32_0 = arith.constant 0 : i32
    %c0_i32_1 = arith.constant 0 : i32
    return %c0_i32, %c0_i32_0 : i32, i32
  }
  func.func @transform_7(%arg0: i32, %arg1: i32) -> (i32, i32, i32) {
    %c0_i32 = arith.constant 0 : i32
    %c0_i32_0 = arith.constant 0 : i32
    return %arg0, %c0_i32, %arg1 : i32, i32, i32
  }
}

</mosaic_0001>

<bundles_post_ra>
// kernel: squeeze.1
= control target key start
LH: loop header
LB: loop body
LE: loop exit
PB: predicated region body
PF: predicated region fallthrough
CT: control target
= control target key end

     0   :  { %s202_s0 = inlined_call_operand.vmem [shape: f32[2,128], index: 0, kind: input, shape index: {}]   ;;  %s203_s1 = inlined_call_operand.hbm [shape: f32[2,2,8,8], index: 1, kind: output, shape index: {}]  }
   0x1   :  { %v5_v0 = vld [vmem:[%s202_s0] sm:$0x3] }
   0x2   :  { %2 = vsyncpa [#allocation1], 0  ;;  %6 = vst [vmem:[#allocation2] sm:$0x3] %v5_v0  ;;  %s154_s0 = smov 104   ;;  %s155_s8 = smov 120  }
   0x3   :  { %s156_s9 = smov 88   ;;  %s157_s10 = smov 96   ;;  %vm8_vm0 = vcmask 64512  }
   0x4   :  { %s158_s11 = smov 112   ;;  %s159_s12 = smov 80  }
   0x5   :  { %s160_s13 = smov 64   ;;  %s161_s14 = smov 72  }
   0x6   :  { %s162_s15 = smov 56   ;;  %s163_s16 = smov 40  }
   0x7   :  { %s164_s17 = smov 48   ;;  %s165_s18 = smov 32  }
   0x8   :  { %s166_s19 = smov 16   ;;  %s167_s20 = smov 24  }
   0x9   :  { %v22_v1 = vld [vmem:[#allocation2] sm:$0x3]   ;;  %s168_s21 = smov 8   ;;  %s169_s22 = smov [#allocation0]  }
   0xa   :  { %v10_v2 = vld [vmem:[#allocation2] sm:$0x3]   ;;  %23 = vrot.lane.b32.xlu1 %v22_v1, %s154_s0  ;;  %s103_s23 = sshll.u32 %s169_s22, 4  ;;  %s105_s1 = sshll.u32 %s203_s1, 4  ;;  %s104_s23 = int_to_ptr.vmem [resolvable:$true] %s103_s23  ;;  %s106_s1 = int_to_ptr.hbm [resolvable:$true] %s105_s1 }
   0xb   :  { %11 = vrot.lane.b32.xlu0 %v10_v2, %s155_s8  ;;  %v34_v3 = vld [vmem:[#allocation2] sm:$0x3]  }
   0xc   :  { %35 = vrot.lane.b32.xlu2 %v34_v3, %s156_s9  ;;  %v28_v4 = vld [vmem:[#allocation2] sm:$0x3]  }
   0xd   :  { %v16_v5 = vld [vmem:[#allocation2] sm:$0x3]  }
   0xe   :  { %v40_v6 = vld [vmem:[#allocation2] sm:$0x3]  }
   0xf   :  { %v52_v7 = vld [vmem:[#allocation2] sm:$0x3]  }
  0x10   :  { %v46_v8 = vld [vmem:[#allocation2] sm:$0x3]  }
  0x11   :  { %v58_v9 = vld [vmem:[#allocation2] sm:$0x3]  }
  0x12   :  { %29 = vrot.lane.b32.xlu1 %v28_v4, %s157_s10  ;;  %v70_v10 = vld [vmem:[#allocation2] sm:$0x3]  }
  0x13   :  { %17 = vrot.lane.b32.xlu0 %v16_v5, %s158_s11  ;;  %v64_v11 = vld [vmem:[#allocation2] sm:$0x3]  }
  0x14   :  { %41 = vrot.lane.b32.xlu2 %v40_v6, %s159_s12  ;;  %v76_v12 = vld [vmem:[#allocation2] sm:$0x3]  }
  0x15   :  { %v88_v13 = vld [vmem:[#allocation2] sm:$0x3]  }
  0x16   :  { %v82_v14 = vld [vmem:[#allocation2] sm:$0x3]  }
  0x17   :  { %v94_v15 = vld [vmem:[#allocation2] sm:$0x3]  }
  0x18   :  { %v7_v21 = vld [vmem:[#allocation2] sm:$0x3]  }
  0x19   :  { %9 = vst.msk [vmem:[#allocation0] ss:$16 sm:$0x3] %vm8_vm0, %v7_v21  }
  0x1a   :  { %53 = vrot.lane.b32.xlu1 %v52_v7, %s160_s13 }
  0x1b   :  { %47 = vrot.lane.b32.xlu0 %v46_v8, %s161_s14 }
  0x1c   :  { %59 = vrot.lane.b32.xlu2 %v58_v9, %s162_s15 }
  0x22   :  { %71 = vrot.lane.b32.xlu1 %v70_v10, %s163_s16 }
  0x23   :  { %65 = vrot.lane.b32.xlu0 %v64_v11, %s164_s17 }
  0x24   :  { %77 = vrot.lane.b32.xlu2 %v76_v12, %s165_s18 }
  0x2a   :  { %89 = vrot.lane.b32.xlu1 %v88_v13, %s166_s19 }
  0x2b   :  { %83 = vrot.lane.b32.xlu0 %v82_v14, %s167_s20 }
  0x2c   :  { %95 = vrot.lane.b32.xlu2 %v94_v15, %s168_s21 }
  0x66   :  { %v36_v16 = vpop.permute.xlu2 %35  }
  0x67   :  { %39 = vst.msk [vmem:[#allocation0 + $0x5] ss:$16 sm:$0x3] %vm8_vm0, %v36_v16  }
  0x6e   :  { %v42_v17 = vpop.permute.xlu2 %41  }
  0x6f   :  { %45 = vst.msk [vmem:[#allocation0 + $0x6] ss:$16 sm:$0x3] %vm8_vm0, %v42_v17  }
  0x76   :  { %v60_v18 = vpop.permute.xlu2 %59  }
  0x77   :  { %63 = vst.msk [vmem:[#allocation0 + $0x9] ss:$16 sm:$0x3] %vm8_vm0, %v60_v18  }
  0x7c   :  { %v24_v19 = vpop.permute.xlu1 %23  }
  0x7d   :  { %v12_v20 = vpop.permute.xlu0 %11   ;;  %27 = vst.msk [vmem:[#allocation0 + $0x3] ss:$16 sm:$0x3] %vm8_vm0, %v24_v19  }
  0x7e   :  { %15 = vst.msk [vmem:[#allocation0 + $0x1] ss:$16 sm:$0x3] %vm8_vm0, %v12_v20   ;;  %v78_v22 = vpop.permute.xlu2 %77  }
  0x7f   :  { %81 = vst.msk [vmem:[#allocation0 + $0xc] ss:$16 sm:$0x3] %vm8_vm0, %v78_v22  }
  0x84   :  { %v30_v23 = vpop.permute.xlu1 %29  }
  0x85   :  { %v18_v24 = vpop.permute.xlu0 %17   ;;  %33 = vst.msk [vmem:[#allocation0 + $0x4] ss:$16 sm:$0x3] %vm8_vm0, %v30_v23  }
  0x86   :  { %21 = vst.msk [vmem:[#allocation0 + $0x2] ss:$16 sm:$0x3] %vm8_vm0, %v18_v24   ;;  %v96_v25 = vpop.permute.xlu2 %95  }
  0x87   :  { %99 = vst.msk [vmem:[#allocation0 + $0xf] ss:$16 sm:$0x3] %vm8_vm0, %v96_v25  }
  0x8c   :  { %v54_v26 = vpop.permute.xlu1 %53  }
  0x8d   :  { %v48_v27 = vpop.permute.xlu0 %47   ;;  %57 = vst.msk [vmem:[#allocation0 + $0x8] ss:$16 sm:$0x3] %vm8_vm0, %v54_v26  }
  0x8e   :  { %51 = vst.msk [vmem:[#allocation0 + $0x7] ss:$16 sm:$0x3] %vm8_vm0, %v48_v27  }
  0x94   :  { %v72_v28 = vpop.permute.xlu1 %71  }
  0x95   :  { %v66_v29 = vpop.permute.xlu0 %65   ;;  %75 = vst.msk [vmem:[#allocation0 + $0xb] ss:$16 sm:$0x3] %vm8_vm0, %v72_v28  }
  0x96   :  { %69 = vst.msk [vmem:[#allocation0 + $0xa] ss:$16 sm:$0x3] %vm8_vm0, %v66_v29  }
  0x9c   :  { %v90_v30 = vpop.permute.xlu1 %89  }
  0x9d   :  { %v84_v31 = vpop.permute.xlu0 %83   ;;  %93 = vst.msk [vmem:[#allocation0 + $0xe] ss:$16 sm:$0x3] %vm8_vm0, %v90_v30  }
  0x9e   :  { %87 = vst.msk [vmem:[#allocation0 + $0xd] ss:$16 sm:$0x3] %vm8_vm0, %v84_v31  }
  0x9f   :  { %108 = dma.vmem_to_hbm [thread:$0]  %s104_s23, 512, %s106_s1, [#allocation1]  }
  0xa0   :  { %152 = dma.done.wait [#allocation1], 512  }
  0xa1   :  { %153 = vsyncadd [#allocation1], 4294966784 }
  0xa2   :  { %111 = vsyncpa [#allocation1], 1 }

// kernel: stable_mlp_forward.1
= control target key start
LH: loop header
LB: loop body
LE: loop exit
PB: predicated region body
PF: predicated region fallthrough
CT: control target
= control target key end

     0   :  { %s1620_s26 = smov 0   ;;  %s1622_s27 = smov 0   ;;  %s2439_s0 = inlined_call_operand.vmem [shape: f32[2,12,128], index: 0, kind: input, shape index: {}]   ;;  %s2440_s1 = inlined_call_operand.vmem [shape: bf16[64,12], index: 1, kind: input, shape index: {}]   ;;  %s2441_s2 = inlined_call_operand.vmem [shape: f32[64,1], index: 2, kind: input, shape index: {}]   ;;  %s2442_s3 = inlined_call_operand.vmem [shape: bf16[64,64], index: 3, kind: input, shape index: {}]   ;;  %s2443_s4 = inlined_call_operand.vmem [shape: f32[64,1], index: 4, kind: input, shape index: {}]   ;;  %s2444_s5 = inlined_call_operand.vmem [shape: f32[64,1], index: 5, kind: input, shape index: {}]   ;;  %s2445_s6 = inlined_call_operand.<no memory space> [shape: f32[1,1], index: 6, kind: input, shape index: {}]   ;;  %s2446_s7 = inlined_call_operand.vmem [shape: f32[2,1,128], index: 7, kind: output, shape index: {}]  }
   0x1   :  { %v12_v0 = vstv %s2445_s6  ;;  %s1624_s28 = smov 0  }
   0x2   :  { %13 = vst [vmem:[#allocation2] sm:$0x1] %v12_v0 }
   0x3 LB: > { %s31_s6 = sadd.s32 1, %s1570_s27  ;;  %p1415_p0 = scmp.ge.s32.totalorder %s1574_s28, 1  ;;  %s1574_s28 = sphi %s1624_s28, %s19_s28   ;;  %s1570_s27 = sphi %s1622_s27, %s2480_s27   ;;  %s1566_s26 = sphi %s1620_s26, %s2479_s26  }
   0x4   : > { %p33_p1 = scmp.ge.s32.totalorder %s31_s6, 2  ;;  %p258_p2 = scmp.lt.s32.totalorder %s1574_s28, 3 }
   0x6   : > { %s2482_s6 = smov (%p33_p1, %s31_s6), 0  ;;  %p259_p3 = pnand %p1415_p0, %p258_p2 }
   0x7   : > { %p294_p4 = scmp.lt.s32.totalorder (!%p259_p3), %s1566_s26, 1 }
   0x8   : > { %262 = sbr.rel (%p259_p3) target bundleno = 541 (0x21d), region = 48 }
   0xd   : > { %v326_v1 = vld [vmem:[%s2441_s2 + $0x30] sm:$0xff]  ;;  %v324_v2 = vld [vmem:[%s2441_s2 + $0x20] sm:$0xff]  ;;  %v1576_v3 = vmov 0   ;;  %s2484_s26 = smov (!%p294_p4, %s1566_s26), 1  ;;  %vm401_vm0 = vcmask 1045504   ;;  %v327_v7 = vld [vmem:[%s2441_s2 + $0x38] sm:$0xff] }
   0xe   : > { %1515 = vset.pattern.permute.xlu0 %v1576_v3  ;;  %1516 = vset.pattern.permute.xlu1 %v1576_v3  ;;  %s1476_s10 = sshll.u32 %s2484_s26, 4  ;;  %v322_v4 = vld [vmem:[%s2441_s2 + $0x10] sm:$0xff]  ;;  %v325_v9 = vld [vmem:[%s2441_s2 + $0x28] sm:$0xff]  ;;  %v1477_v11 = vld [vmem:[%s2440_s1] sm:$0xff]  ;;  %vm388_vm1 = vcmask 97280   ;;  %s307_s16 = scalar_lea.vmem %s2446_s7, %s2484_s26 }
   0xf   : > { %360 = vperm.xlu0 %1515, %v326_v1   ;;  %350 = vperm.xlu1 %1516, %v324_v2   ;;  %s301_s15 = scalar_lea.vmem %s2439_s0, %s1476_s10  ;;  %v1478_v12 = vld [vmem:[%s2440_s1 + $0x8] sm:$0xff]  ;;  %v323_v13 = vld [vmem:[%s2441_s2 + $0x18] sm:$0xff]  ;;  %v320_v14 = vld [vmem:[%s2441_s2] sm:$0xff] }
  0x10   : > { %1517 = vset.pattern.permute.xlu2 %v1576_v3  ;;  %v309_v5 = vld [vmem:[%s301_s15] sm:$0xff]  ;;  %v310_v6 = vld [vmem:[%s301_s15 + $0x8] sm:$0xf]  ;;  %v800_v18 = vld [vmem:[%s2443_s4 + $0x10] sm:$0xff] }
  0x11   : > { %340 = vperm.xlu2 %1517, %v322_v4   ;;  %v311_v8 = vpack.c.bf16 %v310_v6, %v309_v5  ;;  %v321_v15 = vld [vmem:[%s2441_s2 + $0x8] sm:$0xff]  ;;  %v798_v16 = vld [vmem:[%s2443_s4] sm:$0xff]  ;;  %v1479_v19 = vld [vmem:[%s2440_s1 + $0x10] sm:$0xff] }
  0x12   : > { %v799_v17 = vld [vmem:[%s2443_s4 + $0x8] sm:$0xff]  ;;  %v801_v20 = vld [vmem:[%s2443_s4 + $0x18] sm:$0xff]  ;;  %v802_v21 = vld [vmem:[%s2443_s4 + $0x20] sm:$0xff] }
  0x13   : > { %v403_v10 = vsel %vm401_vm0, %v311_v8, 0  ;;  %v803_v22 = vld [vmem:[%s2443_s4 + $0x28] sm:$0xff]  ;;  %v804_v23 = vld [vmem:[%s2443_s4 + $0x30] sm:$0xff]  ;;  %v805_v24 = vld [vmem:[%s2443_s4 + $0x38] sm:$0xff] }
  0x14   : > { %412 = vmatpush.bf16.msra.mxu0 %v403_v10  ;;  %1485 = vmatpush.bf16.msra.mxu3 %v403_v10  ;;  %v1260_v25 = vld [vmem:[%s2444_s5] sm:$0xff]  ;;  %v1480_v26 = vld [vmem:[%s2440_s1 + $0x18] sm:$0xff]  ;;  %v1261_v27 = vld [vmem:[%s2444_s5 + $0x8] sm:$0xff] }
  0x15   : > { %v1262_v28 = vld [vmem:[%s2444_s5 + $0x10] sm:$0xff]  ;;  %v1263_v29 = vld [vmem:[%s2444_s5 + $0x18] sm:$0xff]  ;;  %v1264_v30 = vld [vmem:[%s2444_s5 + $0x20] sm:$0xff] }
  0x16   : > { %v1265_v31 = vld [vmem:[%s2444_s5 + $0x28] sm:$0xff]  ;;  %v1266_v32 = vld [vmem:[%s2444_s5 + $0x30] sm:$0xff]  ;;  %v1267_v33 = vld [vmem:[%s2444_s5 + $0x38] sm:$0xff] }
  0x17   : > { %365 = vperm.xlu0 %1515, %v327_v7   ;;  %355 = vperm.xlu1 %1516, %v325_v9   ;;  %v1329_v34 = vld [vmem:[#allocation2] sm:$0x1] }
  0x18   : > { %1434 = vmatmul.msk.bf16.vlgmr.msra.gmra.mxu0 %vm388_vm1, %v1477_v11  ;;  %1435 = vmatmul.msk.bf16.vlgmr.msra.gmra.mxu3 %vm388_vm1, %v1478_v12 }
  0x19   : > { %345 = vperm.xlu2 %1517, %v323_v13  }
  0x1f   : > { %330 = vperm.xlu0 %1515, %v320_v14   ;;  %335 = vperm.xlu1 %1516, %v321_v15  }
  0x21   : > { %808 = vperm.xlu2 %1517, %v798_v16  }
  0x27   : > { %813 = vperm.xlu0 %1515, %v799_v17   ;;  %818 = vperm.xlu1 %1516, %v800_v18  }
  0x28   : > { %1436 = vmatmul.msk.bf16.gmra.mxu3 %vm388_vm1, %v1479_v19 }
  0x29   : > { %823 = vperm.xlu2 %1517, %v801_v20  }
  0x2f   : > { %828 = vperm.xlu0 %1515, %v802_v21   ;;  %833 = vperm.xlu1 %1516, %v803_v22  }
  0x31   : > { %838 = vperm.xlu2 %1517, %v804_v23  }
  0x37   : > { %843 = vperm.xlu0 %1515, %v805_v24   ;;  %1270 = vperm.xlu1 %1516, %v1260_v25  }
  0x38   : > { %1437 = vmatmul.msk.bf16.gmra.mxu3 %vm388_vm1, %v1480_v26 }
  0x39   : > { %1275 = vperm.xlu2 %1517, %v1261_v27  }
  0x3f   : > { %1280 = vperm.xlu0 %1515, %v1262_v28   ;;  %1285 = vperm.xlu1 %1516, %v1263_v29  }
  0x41   : > { %1290 = vperm.xlu2 %1517, %v1264_v30  }
  0x47   : > { %1295 = vperm.xlu0 %1515, %v1265_v31   ;;  %1300 = vperm.xlu1 %1516, %v1266_v32  }
  0x49   : > { %1305 = vperm.xlu2 %1517, %v1267_v33  }
  0x4f   : > { %1332 = vperm.xlu0 %1515, %v1329_v34  }
  0x6b   : > { %v341_v38 = vpop.permute.xlu2 %340 }
  0x73   : > { %v346_v48 = vpop.permute.xlu2 %345 }
  0x81   : > { %v1732_v35 = vpop.permute.xlu0 %360  ;;  %v351_v40 = vpop.permute.xlu1 %350 }
  0x89   : > { %v1734_v36 = vpop.permute.xlu0 %365  ;;  %v356_v50 = vpop.permute.xlu1 %355 }
  0x91   : > { %v331_v39 = vpop.permute.xlu0 %330  ;;  %v336_v1 = vpop.permute.xlu1 %335 }
  0x95   : > { %v414_v37 = vpop.f32.mrf.mxu0 }
  0x96   : > { %v1736_v41 = vadd.f32 %v414_v37, %v331_v39 }
  0x98   : > { %v1741_v44 = vmul.f32 0.70710677, %v1736_v41 }
  0x9a   : > { %v450_v47 = vmul.f32 %v1741_v44, %v1741_v44 }
  0x9b   : > { %v419_v42 = vpop.f32.mrf.mxu3 }
  0x9c   : > { %v1738_v43 = vadd.f32 %v419_v42, %v341_v38  ;;  %v1755_v54 = vmin.f32 %v450_v47, 16.0 }
  0x9d   : > { %v416_v60 = vpop.f32.mrf.mxu0 }
  0x9e   : > { %v1744_v45 = vmul.f32 0.70710677, %v1738_v43  ;;  %v463_v58 = vmul.f32 3.8918573e-05, %v1755_v54  ;;  %v452_v59 = vmul.f32 2.1237322e-06, %v1755_v54  ;;  %v1767_v4 = vadd.f32 %v416_v60, %v336_v1 }
  0xa0   : > { %v530_v46 = vmul.f32 %v1744_v45, %v1744_v45  ;;  %v464_v2 = vadd.f32 0.001143296, %v463_v58  ;;  %v453_v3 = vadd.f32 0.00028619796, %v452_v59  ;;  %v1780_v11 = vmul.f32 0.70710677, %v1767_v4 }
  0xa2   : > { %v1750_v49 = vmin.f32 %v530_v46, 16.0  ;;  %v465_v9 = vmul.f32 %v464_v2, %v1755_v54  ;;  %v454_v10 = vmul.f32 %v453_v3, %v1755_v54  ;;  %v490_v22 = vmul.f32 %v1780_v11, %v1780_v11 }
  0xa3   : > { %v421_v51 = vpop.f32.mrf.mxu3 }
  0xa4   : > { %v1752_v52 = vadd.f32 %v421_v51, %v346_v48  ;;  %v543_v53 = vmul.f32 3.8918573e-05, %v1750_v49  ;;  %v532_v16 = vmul.f32 2.1237322e-06, %v1750_v49  ;;  %v466_v20 = vadd.f32 0.014752088, %v465_v9 }
  0xa5   : > { %v455_v21 = vadd.f32 0.0036580483, %v454_v10  ;;  %v1801_v33 = vmin.f32 %v490_v22, 16.0 }
  0xa6   : > { %v1758_v55 = vmul.f32 0.70710677, %v1752_v52  ;;  %v544_v56 = vadd.f32 0.001143296, %v543_v53  ;;  %v533_v27 = vadd.f32 0.00028619796, %v532_v16  ;;  %v467_v31 = vmul.f32 %v466_v20, %v1755_v54 }
  0xa7   : > { %v456_v32 = vmul.f32 %v455_v21, %v1755_v54  ;;  %v492_v47 = vmul.f32 2.1237322e-06, %v1801_v33 }
  0xa8   : > { %v545_v57 = vmul.f32 %v544_v56, %v1750_v49  ;;  %v570_v61 = vmul.f32 %v1758_v55, %v1758_v55  ;;  %v534_v46 = vmul.f32 %v533_v27, %v1750_v49 }
  0xa9   : > { %v457_v58 = vadd.f32 0.05243302, %v456_v32 }
  0xaa   : > { %v546_v63 = vadd.f32 0.014752088, %v545_v57  ;;  %v1769_v5 = vmin.f32 %v570_v61, 16.0  ;;  %v468_v57 = vadd.f32 0.112945676, %v467_v31 }
  0xab   : > { %v424_v62 = vpop.f32.mrf.mxu3 }
  0xac   : > { %v1765_v0 = vadd.f32 %v424_v62, %v351_v40  ;;  %v547_v7 = vmul.f32 %v546_v63, %v1750_v49  ;;  %v572_v12 = vmul.f32 2.1237322e-06, %v1769_v5  ;;  %v583_v19 = vmul.f32 3.8918573e-05, %v1769_v5 }
  0xad   : > { %v469_v10 = vmul.f32 %v468_v57, %v1755_v54 }
  0xae   : > { %v1772_v6 = vmul.f32 0.70710677, %v1765_v0  ;;  %v548_v15 = vadd.f32 0.112945676, %v547_v7  ;;  %v573_v23 = vadd.f32 0.00028619796, %v572_v12 }
  0xaf   : > { %v584_v30 = vadd.f32 0.001143296, %v583_v19  ;;  %v535_v7 = vadd.f32 0.0036580483, %v534_v46  ;;  %v470_v31 = vadd.f32 0.4994258, %v469_v10 }
  0xb0   : > { %v610_v8 = vmul.f32 %v1772_v6, %v1772_v6  ;;  %v549_v26 = vmul.f32 %v548_v15, %v1750_v49  ;;  %v574_v37 = vmul.f32 %v573_v23, %v1769_v5 }
  0xb1   : > { %v585_v56 = vmul.f32 %v584_v30, %v1769_v5 }
  0xb2   : > { %v1783_v13 = vmin.f32 %v610_v8, 16.0  ;;  %v550_v42 = vadd.f32 0.4994258, %v549_v26  ;;  %v575_v61 = vadd.f32 0.0036580483, %v574_v37 }
  0xb3   : > { %v426_v14 = vpop.f32.mrf.mxu3  ;;  %v493_v8 = vadd.f32 0.00028619796, %v492_v47  ;;  %v586_v9 = vadd.f32 0.014752088, %v585_v56 }
  0xb4   : > { %v1786_v17 = vadd.f32 %v426_v14, %v356_v50  ;;  %v623_v18 = vmul.f32 3.8918573e-05, %v1783_v13  ;;  %v612_v24 = vmul.f32 2.1237322e-06, %v1783_v13  ;;  %v576_v19 = vmul.f32 %v575_v61, %v1769_v5 }
  0xb5   : > { %v587_v30 = vmul.f32 %v586_v9, %v1769_v5 }
  0xb6   : > { %v1794_v25 = vmul.f32 0.70710677, %v1786_v17  ;;  %v624_v28 = vadd.f32 0.001143296, %v623_v18  ;;  %v613_v38 = vadd.f32 0.00028619796, %v612_v24  ;;  %v1830_v18 = vmul.f32 %v457_v58, %v1755_v54 }
  0xb7   : > { %v588_v58 = vadd.f32 0.112945676, %v587_v30 }
  0xb8   : > { %v650_v29 = vmul.f32 %v1794_v25, %v1794_v25  ;;  %v625_v34 = vmul.f32 %v624_v28, %v1783_v13  ;;  %v614_v62 = vmul.f32 %v613_v38, %v1783_v13  ;;  %v536_v28 = vmul.f32 %v535_v7, %v1750_v49 }
  0xba   : > { %v1805_v39 = vmin.f32 %v650_v29, 16.0  ;;  %v626_v50 = vadd.f32 0.014752088, %v625_v34  ;;  %v615_v20 = vadd.f32 0.0036580483, %v614_v62 }
  0xbb   : > { %v429_v40 = vpop.f32.mrf.mxu3 }
  0xbc   : > { %v1810_v48 = vadd.f32 %v429_v40, %v1732_v35  ;;  %v652_v51 = vmul.f32 2.1237322e-06, %v1805_v39  ;;  %v663_v53 = vmul.f32 3.8918573e-05, %v1805_v39  ;;  %v627_v60 = vmul.f32 %v626_v50, %v1783_v13 }
  0xbd   : > { %v551_v35 = vmul.f32 %v550_v42, %v1750_v49  ;;  %v577_v40 = vadd.f32 0.05243302, %v576_v19  ;;  %v616_v46 = vmul.f32 %v615_v20, %v1783_v13  ;;  %v589_v19 = vmul.f32 %v588_v58, %v1769_v5 }
  0xbe   : > { %v1816_v59 = vmul.f32 0.70710677, %v1810_v48  ;;  %v653_v63 = vadd.f32 0.00028619796, %v652_v51  ;;  %v628_v2 = vadd.f32 0.112945676, %v627_v60 }
  0xbf   : > { %v664_v3 = vadd.f32 0.001143296, %v663_v53  ;;  %v1833_v22 = vadd.f32 1.0, %v551_v35  ;;  %v537_v53 = vadd.f32 0.05243302, %v536_v28  ;;  %v578_v35 = vmul.f32 %v577_v40, %v1769_v5 }
  0xc0   : > { %v690_v1 = vmul.f32 %v1816_v59, %v1816_v59  ;;  %v654_v12 = vmul.f32 %v653_v63, %v1805_v39  ;;  %v629_v15 = vmul.f32 %v628_v2, %v1783_v13  ;;  %v494_v63 = vmul.f32 %v493_v8, %v1801_v33 }
  0xc1   : > { %v665_v16 = vmul.f32 %v664_v3, %v1805_v39  ;;  %1518 = vrcp.f32 %v1833_v22  ;;  %v617_v3 = vadd.f32 0.05243302, %v616_v46  ;;  %v471_v8 = vmul.f32 %v470_v31, %v1755_v54 }
  0xc2   : > { %v1825_v14 = vmin.f32 %v690_v1, 16.0  ;;  %v630_v27 = vadd.f32 0.4994258, %v629_v15  ;;  %v655_v32 = vadd.f32 0.0036580483, %v654_v12  ;;  %v538_v20 = vmul.f32 %v537_v53, %v1750_v49 }
  0xc3   : > { %v431_v21 = vpop.f32.mrf.mxu3  ;;  %v666_v29 = vadd.f32 0.014752088, %v665_v16  ;;  %v590_v46 = vadd.f32 0.4994258, %v589_v19  ;;  %vm558_vm6 = vweird.f32 %v1833_v22 }
  0xc4   : > { %v692_v23 = vmul.f32 2.1237322e-06, %v1825_v14  ;;  %v1837_v24 = vadd.f32 %v431_v21, %v1734_v36  ;;  %v703_v26 = vmul.f32 3.8918573e-05, %v1825_v14  ;;  %v631_v38 = vmul.f32 %v630_v27, %v1783_v13 }
  0xc5   : > { %v667_v36 = vmul.f32 %v666_v29, %v1805_v39  ;;  %v656_v60 = vmul.f32 %v655_v32, %v1805_v39  ;;  %v579_v27 = vadd.f32 0.18741608, %v578_v35 }
  0xc6   : > { %v693_v34 = vadd.f32 0.00028619796, %v692_v23  ;;  %v1843_v37 = vmul.f32 0.70710677, %v1837_v24  ;;  %v704_v42 = vadd.f32 0.001143296, %v703_v26 }
  0xc7   : > { %v1852_v51 = vadd.f32 1.0, %v631_v38  ;;  %v668_v57 = vadd.f32 0.112945676, %v667_v36  ;;  %v1865_v12 = vpop.eup %1518  ;;  %v657_v21 = vadd.f32 0.05243302, %v656_v60 }
  0xc8   : > { %v694_v47 = vmul.f32 %v693_v34, %v1825_v14  ;;  %v730_v50 = vmul.f32 %v1843_v37, %v1843_v37  ;;  %v705_v56 = vmul.f32 %v704_v42, %v1825_v14  ;;  %v618_v34 = vmul.f32 %v617_v3, %v1783_v13 }
  0xc9   : > { %1520 = vrcp.f32 %v1852_v51  ;;  %v669_v2 = vmul.f32 %v668_v57, %v1805_v39  ;;  %v554_v31 = vmul.f32 %v1865_v12, %v1833_v22  ;;  %v1879_v42 = vadd.f32 0.0036580483, %v494_v63 }
  0xca   : > { %v695_v61 = vadd.f32 0.0036580483, %v694_v47  ;;  %v1856_v62 = vmin.f32 %v730_v50, 16.0  ;;  %v706_v1 = vadd.f32 0.014752088, %v705_v56  ;;  %v1882_v47 = vadd.f32 1.0, %v471_v8 }
  0xcb   : > { %v670_v16 = vadd.f32 0.4994258, %v669_v2  ;;  %v539_v50 = vadd.f32 0.18741608, %v538_v20  ;;  %v658_v53 = vmul.f32 %v657_v21, %v1805_v39  ;;  %v580_v63 = vmul.f32 %v579_v27, %v1769_v5 }
  0xcc   : > { %v696_v7 = vmul.f32 %v695_v61, %v1825_v14  ;;  %v732_v9 = vmul.f32 2.1237322e-06, %v1856_v62  ;;  %v743_v10 = vmul.f32 3.8918573e-05, %v1856_v62  ;;  %v707_v15 = vmul.f32 %v706_v1, %v1825_v14 }
  0xcd   : > { %v671_v30 = vmul.f32 %v670_v16, %v1805_v39  ;;  %v619_v1 = vadd.f32 0.18741608, %v618_v34  ;;  %v555_v3 = vsub.f32 1.0, %v554_v31  ;;  %v659_v16 = vadd.f32 0.18741608, %v658_v53 }
  0xce   : > { %v733_v23 = vadd.f32 0.00028619796, %v732_v9  ;;  %v744_v26 = vadd.f32 0.001143296, %v743_v10  ;;  %v697_v28 = vadd.f32 0.05243302, %v696_v7  ;;  %v591_v10 = vmul.f32 %v590_v46, %v1769_v5 }
  0xcf   : > { %v708_v29 = vadd.f32 0.112945676, %v707_v15  ;;  %v1872_v32 = vpop.eup %1520  ;;  %v1888_v35 = vadd.f32 1.0, %v671_v30  ;;  %v540_v15 = vmul.f32 %v539_v50, %v1750_v49  ;;  %v620_v27 = vmul.f32 %v619_v1, %v1783_v13 }
  0xd0   : > { %v734_v38 = vmul.f32 %v733_v23, %v1856_v62  ;;  %v745_v40 = vmul.f32 %v744_v26, %v1856_v62  ;;  %v698_v58 = vmul.f32 %v697_v28, %v1825_v14  ;;  %v634_v61 = vmul.f32 %v1872_v32, %v1852_v51 }
  0xd1   : > { %v709_v36 = vmul.f32 %v708_v29, %v1825_v14  ;;  %1522 = vrcp.f32 %v1888_v35  ;;  %v564_v23 = vand.u32 2147483648, %v1833_v22  ;;  %v581_v26 = vadd.f32 1.1283791, %v580_v63 }
  0xd2   : > { %v735_v56 = vadd.f32 0.0036580483, %v734_v38  ;;  %v746_v57 = vadd.f32 0.014752088, %v745_v40  ;;  %1524 = vrcp.f32 %v1882_v47  ;;  %v699_v8 = vadd.f32 0.18741608, %v698_v58 }
  0xd3   : > { %v710_v60 = vadd.f32 0.4994258, %v709_v36  ;;  %v635_v21 = vsub.f32 1.0, %v634_v61  ;;  %v1904_v29 = vmul.f32 3.8918573e-05, %v1801_v33  ;;  %v556_v49 = vmul.f32 %v1865_v12, %v555_v3 }
  0xd4   : > { %v747_v2 = vmul.f32 %v746_v57, %v1856_v62  ;;  %v736_v7 = vmul.f32 %v735_v56, %v1856_v62  ;;  %v1908_v30 = vadd.f32 1.0, %v591_v10  ;;  %v1910_v34 = vadd.f32 1.1283791, %v540_v15 }
  0xd5   : > { %v711_v9 = vmul.f32 %v710_v60, %v1825_v14  ;;  %v660_v38 = vmul.f32 %v659_v16, %v1805_v39  ;;  %v562_v31 = vand.u32 2147483647, %v1833_v22  ;;  %v700_v36 = vmul.f32 %v699_v8, %v1825_v14 }
  0xd6   : > { %v748_v19 = vadd.f32 0.112945676, %v747_v2  ;;  %v737_v5 = vadd.f32 0.05243302, %v736_v7  ;;  %v636_v46 = vmul.f32 %v1872_v32, %v635_v21  ;;  %v642_v50 = vand.u32 2147483647, %v1852_v51 }
  0xd7   : > { %v1898_v20 = vadd.f32 1.0, %v711_v9  ;;  %v1914_v13 = vpop.eup %1522  ;;  %v1919_v53 = vor.u32 1.1754944e-38, %v564_v23  ;;  %v1924_v57 = vmul.f32 %v581_v26, %v1758_v55  ;;  %v644_v58 = vand.u32 2147483648, %v1852_v51 }
  0xd8   : > { %v749_v28 = vmul.f32 %v748_v19, %v1856_v62  ;;  %v1921_v56 = vpop.eup %1524  ;;  %v674_v60 = vmul.f32 %v1914_v13, %v1888_v35  ;;  %v1930_v61 = vadd.f32 1.1283791, %v620_v27  ;;  %v738_v14 = vmul.f32 %v737_v5, %v1856_v62 }
  0xd9   : > { %1526 = vrcp.f32 %v1898_v20  ;;  %v1934_v63 = vadd.f32 %v1865_v12, %v556_v49  ;;  %v661_v1 = vadd.f32 1.1283791, %v660_v38  ;;  %vm638_vm2 = vweird.f32 %v1852_v51 }
  0xda   : > { %v750_v40 = vadd.f32 0.4994258, %v749_v28  ;;  %1528 = vrcp.f32 %v1908_v30  ;;  %v675_v55 = vsub.f32 1.0, %v674_v60  ;;  %v701_v7 = vadd.f32 1.1283791, %v700_v36 }
  0xdb   : > { %v637_v9 = vadd.f32 %v1872_v32, %v636_v46  ;;  %vm639_vm3 = vweird.f32 %v1872_v32  ;;  %vm1942_vm4 = vcmp.eq.f32.partialorder %v642_v50, 8.507059e+37  ;;  %vm559_vm5 = vweird.f32 %v1865_v12 }
  0xdc   : > { %v751_v39 = vmul.f32 %v750_v40, %v1856_v62  ;;  %v645_v16 = vor.u32 1.1754944e-38, %v644_v58  ;;  %v682_v19 = vand.u32 2147483647, %v1888_v35  ;;  %v739_v8 = vadd.f32 0.18741608, %v738_v14  ;;  %vm1957_vm7 = vmor %vm638_vm2, %vm639_vm3 }
  0xdd   : > { %v722_v21 = vand.u32 2147483647, %v1898_v20  ;;  %v724_v23 = vand.u32 2147483648, %v1898_v20  ;;  %v676_v26 = vmul.f32 %v1914_v13, %v675_v55  ;;  %v662_v27 = vmul.f32 %v661_v1, %v1794_v25  ;;  %vm2010_vm3 = vmor %vm558_vm6, %vm559_vm5 }
  0xde   : > { %v1937_v2 = vadd.f32 1.0, %v751_v39  ;;  %vm678_vm8 = vweird.f32 %v1888_v35  ;;  %v684_v49 = vand.u32 2147483648, %v1888_v35  ;;  %v702_v40 = vmul.f32 %v701_v7, %v1816_v59 }
  0xdf   : > { %v1527_v3 = vpop.eup %1526  ;;  %v641_v36 = vsel %vm1957_vm7, %v1872_v32, %v637_v9  ;;  %v677_v25 = vadd.f32 %v1914_v13, %v676_v26  ;;  %vm679_vm9 = vweird.f32 %v1914_v13  ;;  %vm718_vm10 = vweird.f32 %v1898_v20 }
  0xe0   : > { %v714_v15 = vmul.f32 %v1527_v3, %v1898_v20  ;;  %1530 = vrcp.f32 %v1937_v2  ;;  %v1529_v38 = vpop.eup %1528  ;;  %vm719_vm11 = vweird.f32 %v1527_v3  ;;  %v740_v50 = vmul.f32 %v739_v8, %v1856_v62  ;;  %vm1984_vm14 = vmor %vm678_vm8, %vm679_vm9 }
  0xe1   : > { %v594_v46 = vmul.f32 %v1529_v38, %v1908_v30  ;;  %vm1972_vm12 = vcmp.eq.f32.partialorder %v722_v21, 8.507059e+37  ;;  %v725_v59 = vor.u32 1.1754944e-38, %v724_v23  ;;  %vm1976_vm13 = vcmp.eq.f32.partialorder %v682_v19, 8.507059e+37  ;;  %vm720_vm15 = vmor %vm718_vm10, %vm719_vm11 }
  0xe2   : > { %v715_v28 = vsub.f32 1.0, %v714_v15  ;;  %v646_v14 = vsel %vm1942_vm4, %v645_v16, %v641_v36  ;;  %v685_v62 = vor.u32 1.1754944e-38, %v684_v49  ;;  %v681_v7 = vsel %vm1984_vm14, %v1914_v13, %v677_v25 }
  0xe3   : > { %v595_v1 = vsub.f32 1.0, %v594_v46  ;;  %vm1992_vm0 = vcmp.eq.f32.partialorder %v562_v31, 8.507059e+37  ;;  %vm598_vm1 = vweird.f32 %v1908_v30  ;;  %v602_v35 = vand.u32 2147483647, %v1908_v30 }
  0xe4   : > { %v716_v51 = vmul.f32 %v1527_v3, %v715_v28  ;;  %vm599_vm2 = vweird.f32 %v1529_v38  ;;  %v604_v16 = vand.u32 2147483648, %v1908_v30  ;;  %v741_v19 = vadd.f32 1.1283791, %v740_v50 }
  0xe5   : > { %v596_v15 = vmul.f32 %v1529_v38, %v595_v1  ;;  %v504_v13 = vadd.f32 0.001143296, %v1904_v29  ;;  %v762_v31 = vand.u32 2147483647, %v1937_v2  ;;  %v764_v23 = vand.u32 2147483648, %v1937_v2  ;;  %vm600_vm7 = vmor %vm598_vm1, %vm599_vm2 }
  0xe6   : > { %v1531_v32 = vpop.eup %1530  ;;  %v717_v60 = vadd.f32 %v1527_v3, %v716_v51  ;;  %v686_v26 = vsel %vm1976_vm13, %v685_v62, %v681_v7  ;;  %v622_v36 = vmul.f32 %v1930_v61, %v1772_v6  ;;  %v561_v22 = vsel %vm2010_vm3, %v1865_v12, %v1934_v63 }
  0xe7   : > { %v754_v55 = vmul.f32 %v1531_v32, %v1937_v2  ;;  %v597_v28 = vadd.f32 %v1529_v38, %v596_v15  ;;  %vm759_vm4 = vweird.f32 %v1531_v32  ;;  %v505_v29 = vmul.f32 %v504_v13, %v1801_v33 }
  0xe8   : > { %v721_v10 = vsel %vm720_vm15, %v1527_v3, %v717_v60  ;;  %v605_v51 = vor.u32 1.1754944e-38, %v604_v16  ;;  %vm758_vm5 = vweird.f32 %v1937_v2  ;;  %vm603_vm6 = vcmp.eq.f32.partialorder %v602_v35, 8.507059e+37 }
  0xe9   : > { %v726_v8 = vsel %vm1972_vm12, %v725_v59, %v721_v10  ;;  %v755_v21 = vsub.f32 1.0, %v754_v55  ;;  %v601_v25 = vsel %vm600_vm7, %v1529_v38, %v597_v28  ;;  %vm760_vm8 = vmor %vm758_vm5, %vm759_vm4  ;;  %v765_v30 = vor.u32 1.1754944e-38, %v764_v23 }
  0xea   : > { %v727_v5 = vmul.f32 %v726_v8, %v702_v40  ;;  %v687_v40 = vmul.f32 %v686_v26, %v662_v27  ;;  %v647_v50 = vmul.f32 %v646_v14, %v622_v36  ;;  %v606_v39 = vsel %vm603_vm6, %v605_v51, %v601_v25 }
  0xeb   : > { %v756_v49 = vmul.f32 %v1531_v32, %v755_v21  ;;  %v506_v59 = vadd.f32 0.014752088, %v505_v29  ;;  %v742_v58 = vmul.f32 %v741_v19, %v1843_v37  ;;  %vm763_vm9 = vcmp.eq.f32.partialorder %v762_v31, 8.507059e+37 }
  0xec   : > { %v1444_v6 = vclamps-f32 %v727_v5, 1.0  ;;  %v542_v12 = vmul.f32 %v1910_v34, %v1744_v45  ;;  %v566_v2 = vsel %vm1992_vm0, %v1919_v53, %v561_v22  ;;  %v1443_v60 = vclamps-f32 %v687_v40, 1.0 }
  0xed   : > { %v757_v46 = vadd.f32 %v1531_v32, %v756_v49  ;;  %v507_v27 = vmul.f32 %v506_v59, %v1801_v33  ;;  %v607_v14 = vmul.f32 %v606_v39, %v1924_v57  ;;  %v474_v37 = vmul.f32 %v1921_v56, %v1882_v47 }
  0xee   : > { %v776_v45 = vadd.f32 1.0, %v1444_v6  ;;  %v1442_v34 = vclamps-f32 %v647_v50, 1.0  ;;  %v567_v1 = vmul.f32 %v566_v2, %v542_v12  ;;  %v459_v55 = vadd.f32 0.18741608, %v1830_v18 }
  0xef   : > { %v761_v61 = vsel %vm760_vm8, %v1531_v32, %v757_v46  ;;  %v496_v32 = vmul.f32 %v1879_v42, %v1801_v33  ;;  %v508_v20 = vadd.f32 0.112945676, %v507_v27  ;;  %v440_v53 = vmul.f32 0.5, %v1810_v48 }
  0xf0   : > { %v766_v63 = vsel %vm763_vm9, %v765_v30, %v761_v61  ;;  %v441_v7 = vmul.f32 0.5, %v1837_v24  ;;  %v775_v35 = vadd.f32 1.0, %v1443_v60  ;;  %v1441_v10 = vclamps-f32 %v607_v14, 1.0 }
  0xf1   : > { %v767_v38 = vmul.f32 %v766_v63, %v742_v58  ;;  %v509_v9 = vmul.f32 %v508_v20, %v1801_v33  ;;  %v475_v15 = vsub.f32 1.0, %v474_v37  ;;  %v497_v16 = vadd.f32 0.05243302, %v496_v32 }
  0xf2   : > { %v439_v42 = vmul.f32 0.5, %v1786_v17  ;;  %v784_v8 = vmul.f32 %v776_v45, %v440_v53  ;;  %v774_v13 = vadd.f32 1.0, %v1442_v34  ;;  %v1440_v31 = vclamps-f32 %v567_v1, 1.0 }
  0xf3   : > { %v1445_v62 = vclamps-f32 %v767_v38, 1.0  ;;  %v510_v19 = vadd.f32 0.4994258, %v509_v9  ;;  %v438_v18 = vmul.f32 0.5, %v1765_v0  ;;  %v773_v26 = vadd.f32 1.0, %v1441_v10  ;;  %v809_v10 = vpop.permute.xlu2 %808 }
  0xf4   : > { %v783_v24 = vmul.f32 %v775_v35, %v439_v42  ;;  %v476_v3 = vmul.f32 %v1921_v56, %v475_v15  ;;  %v460_v28 = vmul.f32 %v459_v55, %v1755_v54  ;;  %v498_v5 = vmul.f32 %v497_v16, %v1801_v33  ;;  %v1481_v35 = vld [vmem:[%s2442_s3] sm:$0xff] }
  0xf5   : > { %v777_v57 = vadd.f32 1.0, %v1445_v62  ;;  %v511_v48 = vmul.f32 %v510_v19, %v1801_v33  ;;  %v437_v17 = vmul.f32 0.5, %v1752_v52  ;;  %v782_v29 = vmul.f32 %v774_v13, %v438_v18 }
  0xf6   : > { %v772_v36 = vadd.f32 1.0, %v1440_v31  ;;  %vm478_vm10 = vweird.f32 %v1882_v47  ;;  %vm479_vm11 = vweird.f32 %v1921_v56  ;;  %v436_v0 = vmul.f32 0.5, %v1738_v43  ;;  %v814_v31 = vpop.permute.xlu0 %813 }
  0xf7   : > { %v785_v21 = vmul.f32 %v777_v57, %v441_v7  ;;  %v512_v49 = vadd.f32 1.0, %v511_v48  ;;  %v484_v22 = vand.u32 2147483648, %v1882_v47  ;;  %v796_v25 = vpack.c.bf16 %v783_v24, %v782_v29  ;;  %vm2053_vm12 = vmor %vm478_vm10, %vm479_vm11  ;;  %v819_v24 = vpop.permute.xlu1 %818 }
  0xf8   : > { %v781_v54 = vmul.f32 %v773_v26, %v437_v17  ;;  %v477_v51 = vadd.f32 %v1921_v56, %v476_v3  ;;  %v482_v52 = vand.u32 2147483647, %v1882_v47  ;;  %v461_v40 = vadd.f32 1.1283791, %v460_v28 }
  0xf9   : > { %v797_v23 = vpack.c.bf16 %v785_v21, %v784_v8  ;;  %1532 = vrcp.f32 %v512_v49  ;;  %v499_v30 = vadd.f32 0.18741608, %v498_v5  ;;  %v780_v50 = vmul.f32 %v772_v36, %v436_v0 }
  0xfa   : > { %v485_v39 = vor.u32 1.1754944e-38, %v484_v22  ;;  %v481_v59 = vsel %vm2053_vm12, %v1921_v56, %v477_v51  ;;  %vm483_vm13 = vcmp.eq.f32.partialorder %v482_v52, 8.507059e+37  ;;  %v462_v6 = vmul.f32 %v461_v40, %v1741_v44 }
  0xfb   : > { %883 = vmatpush.bf16.msra.mxu1 %v797_v23  ;;  %1486 = vmatpush.bf16.msra.mxu2 %v797_v23  ;;  %v795_v43 = vpack.c.bf16 %v781_v54, %v780_v50  ;;  %v500_v47 = vmul.f32 %v499_v30, %v1801_v33  ;;  %v524_v63 = vand.u32 2147483648, %v512_v49  ;;  %vm518_vm14 = vweird.f32 %v512_v49 }
  0xfc   : > { %v486_v12 = vsel %vm483_vm13, %v485_v39, %v481_v59  ;;  %v522_v27 = vand.u32 2147483647, %v512_v49  ;;  %v434_v1 = vmul.f32 0.5, %v1736_v41  ;;  %v435_v55 = vmul.f32 0.5, %v1767_v4  ;;  %v1482_v41 = vld [vmem:[%s2442_s3 + $0x8] sm:$0xff]  ;;  %v1484_v4 = vld [vmem:[%s2442_s3 + $0x18] sm:$0xff] }
  0xfd   : > { %v501_v38 = vadd.f32 1.1283791, %v500_v47  ;;  %v487_v60 = vmul.f32 %v486_v12, %v462_v6  ;;  %v525_v56 = vor.u32 1.1754944e-38, %v524_v63  ;;  %vm866_vm2 = vcmask 523264  }
  0xfe   : > { %vm523_vm1 = vcmp.eq.f32.partialorder %v522_v27, 8.507059e+37  ;;  %v829_v3 = vpop.permute.xlu0 %828 }
  0xff   : > { %884 = vmatpush.bf16.msra.mxu1 %v796_v25  ;;  %1487 = vmatpush.bf16.msra.mxu2 %v796_v25  ;;  %v1533_v58 = vpop.eup %1532  ;;  %v502_v44 = vmul.f32 %v501_v38, %v1780_v11  ;;  %v1438_v32 = vclamps-f32 %v487_v60, 1.0  ;;  %v1483_v11 = vld [vmem:[%s2442_s3 + $0x10] sm:$0xff]  ;;  %v834_v52 = vpop.permute.xlu1 %833 }
 0x100   : > { %v514_v61 = vmul.f32 %v1533_v58, %v512_v49  ;;  %vm519_vm15 = vweird.f32 %v1533_v58 }
 0x101   : > { %vm520_vm0 = vmor %vm518_vm14, %vm519_vm15  ;;  %v770_v34 = vadd.f32 1.0, %v1438_v32 }
 0x102   : > { %v515_v2 = vsub.f32 1.0, %v514_v61 }
 0x103   : > { %885 = vmatpush.bf16.msra.mxu1 %v795_v43  ;;  %1488 = vmatpush.bf16.msra.mxu2 %v795_v43  ;;  %v778_v7 = vmul.f32 %v770_v34, %v434_v1 }
 0x104   : > { %v516_v14 = vmul.f32 %v1533_v58, %v515_v2 }
 0x106   : > { %v517_v37 = vadd.f32 %v1533_v58, %v516_v14 }
 0x108   : > { %v521_v33 = vsel %vm520_vm0, %v1533_v58, %v517_v37 }
 0x109   : > { %v526_v20 = vsel %vm523_vm1, %v525_v56, %v521_v33 }
 0x10a   : > { %v527_v62 = vmul.f32 %v526_v20, %v502_v44 }
 0x10c   : > { %v1439_v45 = vclamps-f32 %v527_v62, 1.0 }
 0x10e   : > { %v771_v53 = vadd.f32 1.0, %v1439_v45 }
 0x110   : > { %v779_v9 = vmul.f32 %v771_v53, %v435_v55  ;;  %v824_v55 = vpop.permute.xlu2 %823 }
 0x112   : > { %v794_v57 = vpack.c.bf16 %v779_v9, %v778_v7 }
 0x114   : > { %886 = vmatpush.bf16.msra.mxu1 %v794_v57  ;;  %1489 = vmatpush.bf16.msra.mxu2 %v794_v57 }
 0x117   : > { %1462 = vmatmul.msk.bf16.vlgmr.msra.gmra.mxu1 %vm866_vm2, %v1481_v35  ;;  %1464 = vmatmul.msk.bf16.vlgmr.msra.gmra.mxu2 %vm866_vm2, %v1483_v11 }
 0x127   : > { %1463 = vmatmul.msk.bf16.gmra.mxu1 %vm866_vm2, %v1482_v41  ;;  %1465 = vmatmul.msk.bf16.gmra.mxu2 %vm866_vm2, %v1484_v4 }
 0x194   : > { %v888_v15 = vpop.f32.mrf.mxu1 }
 0x195   : > { %v2077_v16 = vadd.f32 %v888_v15, %v809_v10 }
 0x197   : > { %v2080_v42 = vmul.f32 0.70710677, %v2077_v16 }
 0x199   : > { %v924_v19 = vmul.f32 %v2080_v42, %v2080_v42 }
 0x19a   : > { %v898_v28 = vpop.f32.mrf.mxu2 }
 0x19b   : > { %v2084_v8 = vmin.f32 %v924_v19, 16.0  ;;  %v2089_v5 = vadd.f32 %v898_v28, %v829_v3 }
 0x19c   : > { %v890_v29 = vpop.f32.mrf.mxu1 }
 0x19d   : > { %v937_v21 = vmul.f32 3.8918573e-05, %v2084_v8  ;;  %v2093_v49 = vmul.f32 0.70710677, %v2089_v5  ;;  %v2097_v0 = vadd.f32 %v890_v29, %v814_v31  ;;  %v926_v51 = vmul.f32 2.1237322e-06, %v2084_v8  ;;  %v839_v29 = vpop.permute.xlu2 %838 }
 0x19f   : > { %v938_v13 = vadd.f32 0.001143296, %v937_v21  ;;  %v1084_v36 = vmul.f32 %v2093_v49, %v2093_v49  ;;  %v2102_v54 = vmul.f32 0.70710677, %v2097_v0  ;;  %v927_v59 = vadd.f32 0.00028619796, %v926_v51 }
 0x1a1   : > { %v939_v18 = vmul.f32 %v938_v13, %v2084_v8  ;;  %v2099_v25 = vmin.f32 %v1084_v36, 16.0  ;;  %v964_v40 = vmul.f32 %v2102_v54, %v2102_v54  ;;  %v928_v2 = vmul.f32 %v927_v59, %v2084_v8 }
 0x1a2   : > { %v900_v30 = vpop.f32.mrf.mxu2 }
 0x1a3   : > { %v940_v48 = vadd.f32 0.014752088, %v939_v18  ;;  %v1097_v46 = vmul.f32 3.8918573e-05, %v2099_v25  ;;  %v2109_v39 = vadd.f32 %v900_v30, %v834_v52  ;;  %v2111_v43 = vmin.f32 %v964_v40, 16.0 }
 0x1a4   : > { %v893_v63 = vpop.f32.mrf.mxu1  ;;  %v929_v32 = vadd.f32 0.0036580483, %v928_v2  ;;  %v1086_v62 = vmul.f32 2.1237322e-06, %v2099_v25 }
 0x1a5   : > { %v941_v23 = vmul.f32 %v940_v48, %v2084_v8  ;;  %v1098_v58 = vadd.f32 0.001143296, %v1097_v46  ;;  %v2114_v6 = vmul.f32 0.70710677, %v2109_v39  ;;  %v977_v61 = vmul.f32 3.8918573e-05, %v2111_v43 }
 0x1a6   : > { %v2125_v14 = vadd.f32 %v893_v63, %v819_v24  ;;  %v966_v44 = vmul.f32 2.1237322e-06, %v2111_v43  ;;  %v930_v9 = vmul.f32 %v929_v32, %v2084_v8  ;;  %v1087_v35 = vadd.f32 0.00028619796, %v1086_v62 }
 0x1a7   : > { %v942_v26 = vadd.f32 0.112945676, %v941_v23  ;;  %v1124_v12 = vmul.f32 %v2114_v6, %v2114_v6  ;;  %v1099_v27 = vmul.f32 %v1098_v58, %v2099_v25  ;;  %v978_v38 = vadd.f32 0.001143296, %v977_v61 }
 0x1a8   : > { %v2133_v34 = vmul.f32 0.70710677, %v2125_v14  ;;  %v967_v53 = vadd.f32 0.00028619796, %v966_v44  ;;  %v931_v19 = vadd.f32 0.05243302, %v930_v9  ;;  %v1088_v13 = vmul.f32 %v1087_v35, %v2099_v25 }
 0x1a9   : > { %v943_v17 = vmul.f32 %v942_v26, %v2084_v8  ;;  %v2123_v60 = vmin.f32 %v1124_v12, 16.0  ;;  %v979_v56 = vmul.f32 %v978_v38, %v2111_v43  ;;  %v1100_v33 = vadd.f32 0.014752088, %v1099_v27 }
 0x1aa   : > { %v1004_v4 = vmul.f32 %v2133_v34, %v2133_v34  ;;  %v968_v15 = vmul.f32 %v967_v53, %v2111_v43  ;;  %v903_v3 = vpop.f32.mrf.mxu2  ;;  %v932_v28 = vmul.f32 %v931_v19, %v2084_v8  ;;  %v1089_v36 = vadd.f32 0.0036580483, %v1088_v13 }
 0x1ab   : > { %v944_v22 = vadd.f32 0.4994258, %v943_v17  ;;  %v1137_v37 = vmul.f32 3.8918573e-05, %v2123_v60  ;;  %v980_v20 = vadd.f32 0.014752088, %v979_v56  ;;  %v1101_v57 = vmul.f32 %v1100_v33, %v2099_v25 }
 0x1ac   : > { %v2148_v48 = vmin.f32 %v1004_v4, 16.0  ;;  %v969_v24 = vadd.f32 0.0036580483, %v968_v15  ;;  %v1126_v26 = vmul.f32 2.1237322e-06, %v2123_v60  ;;  %v895_v46 = vpop.f32.mrf.mxu1  ;;  %v2155_v40 = vadd.f32 %v903_v3, %v839_v29 }
 0x1ad   : > { %v945_v50 = vmul.f32 %v944_v22, %v2084_v8  ;;  %v1138_v45 = vadd.f32 0.001143296, %v1137_v37  ;;  %v981_v1 = vmul.f32 %v980_v20, %v2111_v43  ;;  %v1102_v21 = vadd.f32 0.112945676, %v1101_v57 }
 0x1ae   : > { %v1017_v52 = vmul.f32 3.8918573e-05, %v2148_v48  ;;  %v1127_v59 = vadd.f32 0.00028619796, %v1126_v26  ;;  %v2159_v12 = vadd.f32 %v895_v46, %v824_v55  ;;  %v933_v63 = vadd.f32 0.18741608, %v932_v28 }
 0x1af   : > { %v2116_v47 = vadd.f32 1.0, %v945_v50  ;;  %v982_v11 = vadd.f32 0.112945676, %v981_v1  ;;  %v1139_v41 = vmul.f32 %v1138_v45, %v2123_v60  ;;  %v1103_v17 = vmul.f32 %v1102_v21, %v2099_v25 }
 0x1b0   : > { %v970_v50 = vmul.f32 %v969_v24, %v2111_v43  ;;  %v1018_v61 = vadd.f32 0.001143296, %v1017_v52  ;;  %v1090_v2 = vmul.f32 %v1089_v36, %v2099_v25  ;;  %v1006_v37 = vmul.f32 2.1237322e-06, %v2148_v48 }
 0x1b1   : > { %1534 = vrcp.f32 %v2116_v47  ;;  %v983_v31 = vmul.f32 %v982_v11, %v2111_v43  ;;  %v1140_v18 = vadd.f32 0.014752088, %v1139_v41  ;;  %v1104_v58 = vadd.f32 0.4994258, %v1103_v17 }
 0x1b2   : > { %v958_v56 = vand.u32 2147483648, %v2116_v47  ;;  %v1019_v44 = vmul.f32 %v1018_v61, %v2148_v48  ;;  %v2167_v32 = vmul.f32 0.70710677, %v2155_v40  ;;  %v971_v20 = vadd.f32 0.05243302, %v970_v50 }
 0x1b3   : > { %v984_v22 = vadd.f32 0.4994258, %v983_v31  ;;  %v1141_v51 = vmul.f32 %v1140_v18, %v2123_v60  ;;  %v1128_v62 = vmul.f32 %v1127_v59, %v2123_v60  ;;  %v1105_v45 = vmul.f32 %v1104_v58, %v2099_v25 }
 0x1b4   : > { %v1020_v1 = vadd.f32 0.014752088, %v1019_v44  ;;  %v1164_v55 = vmul.f32 %v2167_v32, %v2167_v32  ;;  %v2176_v53 = vmul.f32 0.70710677, %v2159_v12  ;;  %vm952_vm4 = vweird.f32 %v2116_v47 }
 0x1b5   : > { %v985_v27 = vmul.f32 %v984_v22, %v2111_v43  ;;  %v1142_v38 = vadd.f32 0.112945676, %v1141_v51  ;;  %v1091_v9 = vadd.f32 0.05243302, %v1090_v2  ;;  %v934_v11 = vmul.f32 %v933_v63, %v2084_v8 }
 0x1b6   : > { %v956_v4 = vand.u32 2147483647, %v2116_v47  ;;  %v959_v19 = vor.u32 1.1754944e-38, %v958_v56  ;;  %v1021_v21 = vmul.f32 %v1020_v1, %v2148_v48  ;;  %v2192_v13 = vmin.f32 %v1164_v55, 16.0  ;;  %v844_v55 = vpop.permute.xlu0 %843 }
 0x1b7   : > { %v2136_v7 = vpop.eup %1534  ;;  %v2179_v57 = vadd.f32 1.0, %v985_v27  ;;  %v1143_v35 = vmul.f32 %v1142_v38, %v2123_v60  ;;  %v2194_v31 = vadd.f32 1.0, %v1105_v45  ;;  %v972_v8 = vmul.f32 %v971_v20, %v2111_v43  ;;  %v905_v20 = vpop.f32.mrf.mxu2 }
 0x1b8   : > { %v948_v10 = vmul.f32 %v2136_v7, %v2116_v47  ;;  %vm953_vm3 = vweird.f32 %v2136_v7  ;;  %v1129_v18 = vadd.f32 0.0036580483, %v1128_v62  ;;  %v1092_v47 = vmul.f32 %v1091_v9, %v2099_v25 }
 0x1b9   : > { %vm2183_vm7 = vmor %vm952_vm4, %vm953_vm3  ;;  %1536 = vrcp.f32 %v2179_v57  ;;  %v1144_v24 = vadd.f32 0.4994258, %v1143_v35  ;;  %v1022_v26 = vadd.f32 0.112945676, %v1021_v21  ;;  %vm957_vm5 = vcmp.eq.f32.partialorder %v956_v4, 8.507059e+37 }
 0x1ba   : > { %v949_v23 = vsub.f32 1.0, %v948_v10  ;;  %v1007_v10 = vadd.f32 0.00028619796, %v1006_v37  ;;  %v1177_v28 = vmul.f32 3.8918573e-05, %v2192_v13  ;;  %1538 = vrcp.f32 %v2194_v31 }
 0x1bb   : > { %v1023_v29 = vmul.f32 %v1022_v26, %v2148_v48  ;;  %v973_v36 = vadd.f32 0.18741608, %v972_v8  ;;  %v1130_v22 = vmul.f32 %v1129_v18, %v2123_v60  ;;  %v1093_v52 = vadd.f32 0.18741608, %v1092_v47 }
 0x1bc   : > { %v950_v30 = vmul.f32 %v2136_v7, %v949_v23  ;;  %v1044_v23 = vmul.f32 %v2176_v53, %v2176_v53  ;;  %v1008_v3 = vmul.f32 %v1007_v10, %v2148_v48  ;;  %v1145_v46 = vmul.f32 %v1144_v24, %v2123_v60 }
 0x1bd   : > { %v1178_v50 = vadd.f32 0.001143296, %v1177_v28  ;;  %v1166_v61 = vmul.f32 2.1237322e-06, %v2192_v13  ;;  %v2214_v2 = vmul.f32 0.5, %v2077_v16  ;;  %v2217_v27 = vmul.f32 0.5, %v2097_v0 }
 0x1be   : > { %v951_v33 = vadd.f32 %v2136_v7, %v950_v30  ;;  %v2206_v51 = vmin.f32 %v1044_v23, 16.0  ;;  %v1024_v30 = vadd.f32 0.4994258, %v1023_v29  ;;  %v1009_v58 = vadd.f32 0.0036580483, %v1008_v3 }
 0x1bf   : > { %v2211_v63 = vpop.eup %1536  ;;  %v1179_v56 = vmul.f32 %v1178_v50, %v2192_v13  ;;  %v974_v44 = vmul.f32 %v973_v36, %v2111_v43  ;;  %v1094_v62 = vmul.f32 %v1093_v52, %v2099_v25  ;;  %v2226_v45 = vadd.f32 1.0, %v1145_v46 }
 0x1c0   : > { %v955_v15 = vsel %vm2183_vm7, %v2136_v7, %v951_v33  ;;  %v935_v7 = vadd.f32 1.1283791, %v934_v11  ;;  %v1025_v38 = vmul.f32 %v1024_v30, %v2148_v48  ;;  %v1046_v33 = vmul.f32 2.1237322e-06, %v2206_v51  ;;  %v2230_v1 = vpop.eup %1538 }
 0x1c1   : > { %v960_v17 = vsel %vm957_vm5, %v959_v19, %v955_v15  ;;  %v1180_v0 = vadd.f32 0.014752088, %v1179_v56  ;;  %v988_v9 = vmul.f32 %v2211_v63, %v2179_v57  ;;  %v2235_v35 = vmul.f32 0.5, %v2125_v14 }
 0x1c2   : > { %v936_v59 = vmul.f32 %v935_v7, %v2080_v42  ;;  %v1131_v42 = vadd.f32 0.05243302, %v1130_v22  ;;  %v2228_v16 = vadd.f32 1.0, %v1025_v38  ;;  %v1010_v43 = vmul.f32 %v1009_v58, %v2148_v48 }
 0x1c3   : > { %v1167_v11 = vadd.f32 0.00028619796, %v1166_v61  ;;  %v1047_v25 = vadd.f32 0.00028619796, %v1046_v33  ;;  %v1057_v41 = vmul.f32 3.8918573e-05, %v2206_v51  ;;  %v2240_v4 = vadd.f32 %v905_v20, %v844_v55 }
 0x1c4   : > { %v2221_v37 = vmul.f32 %v960_v17, %v936_v59  ;;  %1540 = vrcp.f32 %v2228_v16  ;;  %v1118_v10 = vand.u32 2147483648, %v2194_v31  ;;  %v975_v15 = vadd.f32 1.1283791, %v974_v44 }
 0x1c5   : > { %v1132_v19 = vmul.f32 %v1131_v42, %v2123_v60  ;;  %v1181_v21 = vmul.f32 %v1180_v0, %v2192_v13  ;;  %v2246_v8 = vadd.f32 1.1283791, %v1094_v62  ;;  %v1108_v18 = vmul.f32 %v2230_v1, %v2194_v31 }
 0x1c6   : > { %v1466_v14 = vclamps-f32 %v2221_v37, 1.0  ;;  %1542 = vrcp.f32 %v2226_v45  ;;  %v989_v23 = vsub.f32 1.0, %v988_v9  ;;  %v1011_v47 = vadd.f32 0.05243302, %v1010_v43 }
 0x1c7   : > { %v1168_v24 = vmul.f32 %v1167_v11, %v2192_v13  ;;  %v1182_v26 = vadd.f32 0.112945676, %v1181_v21  ;;  %v1116_v7 = vand.u32 2147483647, %v2194_v31  ;;  %v1048_v3 = vmul.f32 %v1047_v25, %v2206_v51 }
 0x1c8   : > { %v1058_v28 = vadd.f32 0.001143296, %v1057_v41  ;;  %v2255_v17 = vmul.f32 0.70710677, %v2240_v4  ;;  %v2257_v29 = vor.u32 1.1754944e-38, %v1118_v10  ;;  %v2260_v36 = vmul.f32 %v975_v15, %v2102_v54 }
 0x1c9   : > { %v1133_v22 = vadd.f32 0.18741608, %v1132_v19  ;;  %v1183_v52 = vmul.f32 %v1182_v26, %v2192_v13  ;;  %v1109_v30 = vsub.f32 1.0, %v1108_v18  ;;  %v996_v50 = vand.u32 2147483647, %v2179_v57 }
 0x1ca   : > { %v2263_v46 = vpop.eup %1540  ;;  %v1059_v59 = vmul.f32 %v1058_v28, %v2206_v51  ;;  %v1204_v58 = vmul.f32 %v2255_v17, %v2255_v17  ;;  %v990_v61 = vmul.f32 %v2211_v63, %v989_v23  ;;  %v1012_v38 = vmul.f32 %v1011_v47, %v2148_v48 }
 0x1cb   : > { %v1028_v54 = vmul.f32 %v2263_v46, %v2228_v16  ;;  %v1169_v56 = vadd.f32 0.0036580483, %v1168_v24  ;;  %vm992_vm6 = vweird.f32 %v2179_v57  ;;  %v1184_v42 = vadd.f32 0.4994258, %v1183_v52 }
 0x1cc   : > { %v2273_v44 = vpop.eup %1542  ;;  %v1049_v33 = vadd.f32 0.0036580483, %v1048_v3  ;;  %v1060_v20 = vadd.f32 0.014752088, %v1059_v59  ;;  %v998_v62 = vand.u32 2147483648, %v2179_v57  ;;  %v1134_v0 = vmul.f32 %v1133_v22, %v2123_v60 }
 0x1cd   : > { %v1029_v55 = vsub.f32 1.0, %v1028_v54  ;;  %v2278_v9 = vmin.f32 %v1204_v58, 16.0  ;;  %v1110_v43 = vmul.f32 %v2230_v1, %v1109_v30  ;;  %vm993_vm8 = vweird.f32 %v2211_v63 }
 0x1ce   : > { %v1185_v11 = vmul.f32 %v1184_v42, %v2192_v13  ;;  %v1061_v25 = vmul.f32 %v1060_v20, %v2206_v51  ;;  %v991_v41 = vadd.f32 %v2211_v63, %v990_v61  ;;  %v1148_v10 = vmul.f32 %v2273_v44, %v2226_v45  ;;  %vm2300_vm11 = vmor %vm992_vm6, %vm993_vm8 }
 0x1cf   : > { %v1013_v15 = vadd.f32 0.18741608, %v1012_v38  ;;  %v1206_v19 = vmul.f32 2.1237322e-06, %v2278_v9  ;;  %vm1112_vm9 = vweird.f32 %v2194_v31  ;;  %v1170_v60 = vmul.f32 %v1169_v56, %v2192_v13 }
 0x1d0   : > { %v2290_v21 = vadd.f32 1.0, %v1185_v11  ;;  %v1050_v18 = vmul.f32 %v1049_v33, %v2206_v51  ;;  %v1062_v23 = vadd.f32 0.112945676, %v1061_v25  ;;  %vm1113_vm10 = vweird.f32 %v2230_v1 }
 0x1d1   : > { %v1030_v47 = vmul.f32 %v2263_v46, %v1029_v55  ;;  %v1207_v24 = vadd.f32 0.00028619796, %v1206_v19  ;;  %v1217_v26 = vmul.f32 3.8918573e-05, %v2278_v9  ;;  %vm2304_vm12 = vcmp.eq.f32.partialorder %v996_v50, 8.507059e+37  ;;  %vm2344_vm2 = vmor %vm1112_vm9, %vm1113_vm10 }
 0x1d2   : > { %v999_v22 = vor.u32 1.1754944e-38, %v998_v62  ;;  %v1135_v52 = vadd.f32 1.1283791, %v1134_v0  ;;  %1544 = vrcp.f32 %v2290_v21  ;;  %v995_v30 = vsel %vm2300_vm11, %v2211_v63, %v991_v41 }
 0x1d3   : > { %v1149_v59 = vsub.f32 1.0, %v1148_v10  ;;  %v1014_v58 = vmul.f32 %v1013_v15, %v2148_v48  ;;  %v1063_v57 = vmul.f32 %v1062_v23, %v2206_v51  ;;  %v1111_v61 = vadd.f32 %v2230_v1, %v1110_v43 }
 0x1d4   : > { %v1171_v38 = vadd.f32 0.05243302, %v1170_v60  ;;  %v1051_v50 = vadd.f32 0.05243302, %v1050_v18  ;;  %v1218_v54 = vadd.f32 0.001143296, %v1217_v26  ;;  %v1031_v42 = vadd.f32 %v2263_v46, %v1030_v47 }
 0x1d5   : > { %vm2315_vm13 = vcmp.eq.f32.partialorder %v1116_v7, 8.507059e+37  ;;  %vm1033_vm14 = vweird.f32 %v2263_v46  ;;  %v1064_v33 = vadd.f32 0.4994258, %v1063_v57  ;;  %v1208_v63 = vmul.f32 %v1207_v24, %v2278_v9 }
 0x1d6   : > { %v1000_v48 = vsel %vm2304_vm12, %v999_v22, %v995_v30  ;;  %vm1152_vm15 = vweird.f32 %v2226_v45  ;;  %v1156_v20 = vand.u32 2147483647, %v2226_v45  ;;  %v1038_v62 = vand.u32 2147483648, %v2228_v16 }
 0x1d7   : > { %v1219_v7 = vmul.f32 %v1218_v54, %v2278_v9  ;;  %v1015_v0 = vadd.f32 1.1283791, %v1014_v58  ;;  %vm1032_vm0 = vweird.f32 %v2228_v16  ;;  %v1036_v55 = vand.u32 2147483647, %v2228_v16 }
 0x1d8   : > { %v1065_v43 = vmul.f32 %v1064_v33, %v2206_v51  ;;  %v2331_v11 = vpop.eup %1544  ;;  %v1150_v25 = vmul.f32 %v2273_v44, %v1149_v59  ;;  %vm2334_vm1 = vmor %vm1032_vm0, %vm1033_vm14  ;;  %v1172_v10 = vmul.f32 %v1171_v38, %v2192_v13  ;;  %v1052_v15 = vmul.f32 %v1051_v50, %v2206_v51 }
 0x1d9   : > { %v1220_v19 = vadd.f32 0.014752088, %v1219_v7  ;;  %v1035_v60 = vsel %vm2334_vm1, %v2263_v46, %v1031_v42  ;;  %v1188_v18 = vmul.f32 %v2331_v11, %v2290_v21  ;;  %v1209_v47 = vadd.f32 0.0036580483, %v1208_v63 }
 0x1da   : > { %v2353_v23 = vadd.f32 1.0, %v1065_v43  ;;  %v1115_v24 = vsel %vm2344_vm2, %v2230_v1, %v1111_v61  ;;  %v1001_v31 = vmul.f32 %v1000_v48, %v2260_v36  ;;  %v1039_v26 = vor.u32 1.1754944e-38, %v1038_v62 }
 0x1db   : > { %v1221_v3 = vmul.f32 %v1220_v19, %v2278_v9  ;;  %vm1153_vm3 = vweird.f32 %v2273_v44  ;;  %vm1037_vm4 = vcmp.eq.f32.partialorder %v1036_v55, 8.507059e+37  ;;  %v1189_v28 = vsub.f32 1.0, %v1188_v18  ;;  %v1271_v18 = vpop.permute.xlu1 %1270 }
 0x1dc   : > { %1546 = vrcp.f32 %v2353_v23  ;;  %v1151_v46 = vadd.f32 %v2273_v44, %v1150_v25  ;;  %v1040_v22 = vsel %vm1037_vm4, %v1039_v26, %v1035_v60  ;;  %v1173_v30 = vadd.f32 0.18741608, %v1172_v10  ;;  %vm2380_vm7 = vmor %vm1152_vm15, %vm1153_vm3 }
 0x1dd   : > { %v1222_v59 = vadd.f32 0.112945676, %v1221_v3  ;;  %v1158_v58 = vand.u32 2147483648, %v2226_v45  ;;  %v1016_v1 = vmul.f32 %v1015_v0, %v2133_v34  ;;  %v1053_v57 = vadd.f32 0.18741608, %v1052_v15 }
 0x1de   : > { %v1210_v36 = vmul.f32 %v1209_v47, %v2278_v9  ;;  %v1120_v61 = vsel %vm2315_vm13, %v2257_v29, %v1115_v24  ;;  %v1467_v38 = vclamps-f32 %v1001_v31, 1.0  ;;  %v1190_v50 = vmul.f32 %v2331_v11, %v1189_v28 }
 0x1df   : > { %v1223_v54 = vmul.f32 %v1222_v59, %v2278_v9  ;;  %v1244_v42 = vadd.f32 1.0, %v1466_v14  ;;  %v1096_v33 = vmul.f32 %v2246_v8, %v2093_v49  ;;  %v1136_v34 = vmul.f32 %v1135_v52, %v2114_v6 }
 0x1e0   : > { %v1041_v29 = vmul.f32 %v1040_v22, %v1016_v1  ;;  %v1155_v63 = vsel %vm2380_vm7, %v2273_v44, %v1151_v46  ;;  %vm1157_vm5 = vcmp.eq.f32.partialorder %v1156_v20, 8.507059e+37  ;;  %v1174_v37 = vmul.f32 %v1173_v30, %v2192_v13  ;;  %v1276_v30 = vpop.permute.xlu2 %1275 }
 0x1e1   : > { %v1224_v14 = vadd.f32 0.4994258, %v1223_v54  ;;  %v1121_v8 = vmul.f32 %v1120_v61, %v1096_v33  ;;  %v1159_v6 = vor.u32 1.1754944e-38, %v1158_v58  ;;  %v1054_v52 = vmul.f32 %v1053_v57, %v2206_v51  ;;  %v1281_v54 = vpop.permute.xlu0 %1280 }
 0x1e2   : > { %v1547_v49 = vpop.eup %1546  ;;  %v1211_v48 = vadd.f32 0.05243302, %v1210_v36  ;;  %v1245_v45 = vadd.f32 1.0, %v1467_v38  ;;  %v1191_v62 = vadd.f32 %v2331_v11, %v1190_v50  ;;  %vm1193_vm6 = vweird.f32 %v2331_v11 }
 0x1e3   : > { %v1068_v7 = vmul.f32 %v1547_v49, %v2353_v23  ;;  %v1160_v0 = vsel %vm1157_vm5, %v1159_v6, %v1155_v63  ;;  %v1468_v55 = vclamps-f32 %v1041_v29, 1.0  ;;  %v1198_v44 = vand.u32 2147483648, %v2290_v21  ;;  %v1286_v6 = vpop.permute.xlu1 %1285 }
 0x1e4   : > { %v1225_v13 = vmul.f32 %v1224_v14, %v2278_v9  ;;  %v1175_v20 = vadd.f32 1.1283791, %v1174_v37  ;;  %vm1192_vm8 = vweird.f32 %v2290_v21  ;;  %v1196_v43 = vand.u32 2147483647, %v2290_v21 }
 0x1e5   : > { %v1069_v51 = vsub.f32 1.0, %v1068_v7  ;;  %vm2396_vm9 = vmor %vm1192_vm8, %vm1193_vm6  ;;  %v1055_v41 = vadd.f32 1.1283791, %v1054_v52  ;;  %v1078_v10 = vand.u32 2147483648, %v2353_v23  ;;  %v1212_v15 = vmul.f32 %v1211_v48, %v2278_v9 }
 0x1e6   : > { %v2402_v19 = vadd.f32 1.0, %v1225_v13  ;;  %v1195_v16 = vsel %vm2396_vm9, %v2331_v11, %v1191_v62  ;;  %vm1073_vm10 = vweird.f32 %v1547_v49  ;;  %v1076_v21 = vand.u32 2147483647, %v2353_v23 }
 0x1e7   : > { %v1070_v60 = vmul.f32 %v1547_v49, %v1069_v51  ;;  %v1161_v47 = vmul.f32 %v1160_v0, %v1136_v34  ;;  %v1246_v24 = vadd.f32 1.0, %v1468_v55  ;;  %v1199_v31 = vor.u32 1.1754944e-38, %v1198_v44 }
 0x1e8   : > { %1548 = vrcp.f32 %v2402_v19  ;;  %v1470_v26 = vclamps-f32 %v1121_v8, 1.0  ;;  %vm1197_vm11 = vcmp.eq.f32.partialorder %v1196_v43, 8.507059e+37  ;;  %vm1072_vm12 = vweird.f32 %v2353_v23  ;;  %v1291_v55 = vpop.permute.xlu2 %1290 }
 0x1e9   : > { %v1071_v3 = vadd.f32 %v1547_v49, %v1070_v60  ;;  %v1253_v28 = vmul.f32 %v1245_v45, %v2217_v27  ;;  %v1200_v46 = vsel %vm1197_vm11, %v1199_v31, %v1195_v16  ;;  %vm1074_vm13 = vmor %vm1072_vm12, %vm1073_vm10  ;;  %v1079_v11 = vor.u32 1.1754944e-38, %v1078_v10 }
 0x1ea   : > { %v1213_v22 = vadd.f32 0.18741608, %v1212_v15  ;;  %v1176_v59 = vmul.f32 %v1175_v20, %v2167_v32  ;;  %v1056_v58 = vmul.f32 %v1055_v41, %v2176_v53  ;;  %vm1077_vm14 = vcmp.eq.f32.partialorder %v1076_v21, 8.507059e+37  ;;  %v1296_v15 = vpop.permute.xlu0 %1295 }
 0x1eb   : > { %v1075_v1 = vsel %vm1074_vm13, %v1547_v49, %v1071_v3  ;;  %v1252_v57 = vmul.f32 %v1244_v42, %v2214_v2  ;;  %v1471_v36 = vclamps-f32 %v1161_v47, 1.0  ;;  %v1254_v61 = vmul.f32 %v1246_v24, %v2235_v35 }
 0x1ec   : > { %v1080_v38 = vsel %vm1077_vm14, %v1079_v11, %v1075_v1  ;;  %v1201_v23 = vmul.f32 %v1200_v46, %v1176_v59  ;;  %v1248_v33 = vadd.f32 1.0, %v1470_v26  ;;  %v1309_v34 = vmul.f32 %v1276_v30, %v1253_v28  ;;  %v1301_v26 = vpop.permute.xlu1 %1300 }
 0x1ed   : > { %v1081_v50 = vmul.f32 %v1080_v38, %v1056_v58  ;;  %v1214_v56 = vmul.f32 %v1213_v22, %v2278_v9  ;;  %v912_v32 = vmul.f32 0.5, %v2089_v5  ;;  %v1308_v63 = vmul.f32 %v1271_v18, %v1252_v57 }
 0x1ee   : > { %v1549_v27 = vpop.eup %1548  ;;  %v913_v2 = vmul.f32 0.5, %v2109_v39  ;;  %v1249_v42 = vadd.f32 1.0, %v1471_v36  ;;  %v1310_v37 = vmul.f32 %v1281_v54, %v1254_v61  ;;  %v1472_v35 = vclamps-f32 %v1201_v23, 1.0 }
 0x1ef   : > { %v1469_v29 = vclamps-f32 %v1081_v50, 1.0  ;;  %v1228_v53 = vmul.f32 %v1549_v27, %v2402_v19  ;;  %v911_v14 = vmul.f32 0.5, %v2159_v12  ;;  %v1256_v52 = vmul.f32 %v1248_v33, %v912_v32 }
 0x1f0   : > { %v1316_v48 = vadd.f32 %v1309_v34, %v1308_v63  ;;  %v1215_v45 = vadd.f32 1.1283791, %v1214_v56  ;;  %v1238_v9 = vand.u32 2147483648, %v2402_v19  ;;  %vm1233_vm15 = vweird.f32 %v1549_v27  ;;  %v1306_v11 = vpop.permute.xlu2 %1305 }
 0x1f1   : > { %v1247_v49 = vadd.f32 1.0, %v1469_v29  ;;  %v1229_v8 = vsub.f32 1.0, %v1228_v53  ;;  %v1236_v7 = vand.u32 2147483647, %v2402_v19  ;;  %v1257_v0 = vmul.f32 %v1249_v42, %v913_v2 }
 0x1f2   : > { %v1317_v39 = vadd.f32 %v1316_v48, %v1310_v37  ;;  %v1250_v44 = vadd.f32 1.0, %v1472_v35  ;;  %vm1232_vm0 = vweird.f32 %v2402_v19  ;;  %v1312_v12 = vmul.f32 %v1291_v55, %v1256_v52  ;;  %v1333_v57 = vpop.permute.xlu0 %1332 }
 0x1f3   : > { %v1255_v5 = vmul.f32 %v1247_v49, %v911_v14  ;;  %v1230_v62 = vmul.f32 %v1549_v27, %v1229_v8  ;;  %v914_v43 = vmul.f32 0.5, %v2155_v40  ;;  %vm1234_vm1 = vmor %vm1232_vm0, %vm1233_vm15  ;;  %v1239_v51 = vor.u32 1.1754944e-38, %v1238_v9 }
 0x1f4   : > { %v1216_v41 = vmul.f32 %v1215_v45, %v2255_v17  ;;  %vm1237_vm2 = vcmp.eq.f32.partialorder %v1236_v7, 8.507059e+37  ;;  %v1313_v60 = vmul.f32 %v1296_v15, %v1257_v0  ;;  %v915_v3 = vmul.f32 0.5, %v2240_v4 }
 0x1f5   : > { %v1311_v13 = vmul.f32 %v1286_v6, %v1255_v5  ;;  %v1231_v20 = vadd.f32 %v1549_v27, %v1230_v62  ;;  %v1258_v21 = vmul.f32 %v1250_v44, %v914_v43  ;;  %v1335_v61 = vperm.slane %v1333_v57, 0 }
 0x1f7   : > { %v1318_v25 = vadd.f32 %v1317_v39, %v1311_v13  ;;  %v1235_v10 = vsel %vm1234_vm1, %v1549_v27, %v1231_v20  ;;  %v1314_v19 = vmul.f32 %v1301_v26, %v1258_v21 }
 0x1f8   : > { %v1240_v16 = vsel %vm1237_vm2, %v1239_v51, %v1235_v10 }
 0x1f9   : > { %v1319_v18 = vadd.f32 %v1318_v25, %v1312_v12  ;;  %v1241_v47 = vmul.f32 %v1240_v16, %v1216_v41 }
 0x1fb   : > { %v1473_v24 = vclamps-f32 %v1241_v47, 1.0  ;;  %v1320_v31 = vadd.f32 %v1319_v18, %v1313_v60 }
 0x1fd   : > { %v1251_v40 = vadd.f32 1.0, %v1473_v24  ;;  %v1321_v46 = vadd.f32 %v1320_v31, %v1314_v19 }
 0x1ff   : > { %v1259_v28 = vmul.f32 %v1251_v40, %v915_v3 }
 0x201   : > { %v1315_v17 = vmul.f32 %v1306_v11, %v1259_v28 }
 0x203   : > { %v1322_v22 = vadd.f32 %v1321_v46, %v1315_v17 }
 0x205   : > { %v1323_v30 = vrot.slane %v1322_v22, 4 }
 0x207   : > { %v1324_v59 = vadd.f32 %v1323_v30, %v1322_v22 }
 0x209   : > { %v1325_v58 = vrot.slane %v1324_v59, 2 }
 0x20b   : > { %v1326_v1 = vadd.f32 %v1325_v58, %v1324_v59 }
 0x20d   : > { %v1327_v36 = vrot.slane %v1326_v1, 1 }
 0x20f   : > { %v1328_v38 = vadd.f32 %v1327_v36, %v1326_v1 }
 0x211   : > { %v1336_v23 = vadd.f32 %v1335_v61, %v1328_v38 }
 0x213   : > { %1550 = vtanh.f32 %v1336_v23 }
 0x219   : > { %v1551_v50 = vpop.eup %1550 }
 0x21a   : > { %v1338_v4 = vmul.f32 3.1415927, %v1551_v50 }
 0x21c   : > { %1339 = vst [vmem:[%s307_s16] sm:$0x1] %v1338_v4 }
 0x21d PF: > { %s19_s28 = sadd.s32 1, %s1574_s28   ;;  %s2479_s26 = smov %s1570_s27 }
 0x21e   : > { %p16_p5 = scmp.ge.s32.totalorder %s19_s28, 4   ;;  %s2480_s27 = smov %s2482_s6 }
 0x220   :  { %18 = sbr.rel (!%p16_p5) target bundleno = 3 (0x3), region = 78 }

</bundles_post_ra>
